<compile_context>
chip_gen: v7x
topology: tpu7x:2x2x1
jax: 0.10.0
libtpu: 0.0.40
codegen_flags: <defaults>
</compile_context>

<pallas_src>
import functools

import jax
import jax.numpy as jnp
from jax.experimental import pallas as pl
from jax.experimental.pallas import tpu as pltpu

EPS = 1e-5            # nn.BatchNorm1d default eps
LANE = 128            # TPU lane width; feature dims padded to this for dense stores
CO_TILE = 128         # conv output-channel tile (lane-dense)


def _round_up(x, m):
    return ((x + m - 1) // m) * m


def _vmem_limit_bytes():
    # v7x has 64 MiB VMEM per TensorCore, v5e/v6e have 128 MiB; take ~3/4 of capacity
    # and leave the rest for compiler scratch and double-buffering.
    try:
        cap = pltpu.get_tpu_info().vmem_capacity_bytes
    except Exception:
        cap = 64 * 1024 * 1024
    return int(min(cap * 3 // 4, 100 * 1024 * 1024))


VMEM_LIMIT = _vmem_limit_bytes()


# ----------------------------- Pallas kernels ------------------------------ #

def _conv_pool_kernel(x_ref, w_ref, b_ref, valid_ref, o_ref, *, wp2, l_out):
    """Fused conv3x3 (pad=1, stride=1) + bias + ReLU + adaptive-avg-pool.

    x_ref     : (1, Lp, Cin)      bf16  spatially zero-padded image, rows flattened
    w_ref     : (9*Cin, CO_TILE)  bf16  merged-tap conv weights (tap-major, chan-minor)
    b_ref     : (1, CO_TILE)      f32
    valid_ref : (1, l_out)        f32   1/(H*W) at real columns, 0 at width-halo columns
    o_ref     : (1, 1, CO_TILE)   bf16  pooled features for this (batch, Cout tile)
    """
    # One aligned full-block load + upcast; all unaligned shifted-slab slicing then
    # happens on 32-bit register data, only the MXU operand is cast down to bf16.
    xf = x_ref[0].astype(jnp.float32)                            # (Lp, Cin)

    # Fused im2col (nothing hits HBM): 9 statically shifted views of the flattened
    # padded image, concatenated on the contraction axis.  k = 3*di + dj matches the
    # (3,3,Cin,Cout) -> (9*Cin, Cout) weight reshape in the wrapper.
    slabs = [xf[di * wp2 + dj: di * wp2 + dj + l_out, :]
             for di in range(3) for dj in range(3)]              # 9 x (l_out, Cin)
    lhs = jnp.concatenate(slabs, axis=1).astype(jnp.bfloat16)    # (l_out, 9*Cin)

    # Single deep dot (K = 9*Cin) with f32 accumulation; bias + ReLU epilogue in f32.
    conv = jnp.dot(lhs, w_ref[...], preferred_element_type=jnp.float32)
    conv = jnp.maximum(conv + b_ref[...], 0.0)                   # (l_out, CO_TILE)

    # Adaptive avg-pool as one MXU dot: the valid vector carries the 1/(H*W) scale and
    # zeroes the flattened width-halo (junk) columns.
    o_ref[0] = jnp.dot(valid_ref[...], conv,
                       preferred_element_type=jnp.float32).astype(o_ref.dtype)


def _embed_bn_kernel(p_ref, w_ref, b_ref, g_ref, beta_ref, o_ref):
    """Fused Linear(embed) + BatchNorm1d (training-mode batch statistics).

    Must stay at grid=(1,): batch mean/variance need the whole batch resident.
    """
    y = jnp.dot(p_ref[...], w_ref[...],
                preferred_element_type=jnp.float32) + b_ref[...]      # (B, E_pad) f32
    mu = jnp.mean(y, axis=0, keepdims=True)
    var = jnp.maximum(jnp.mean(y * y, axis=0, keepdims=True) - mu * mu, 0.0)
    o_ref[...] = ((y - mu) * jax.lax.rsqrt(var + EPS) * g_ref[...]
                  + beta_ref[...]).astype(o_ref.dtype)


# ------------------------------ Wrappers ----------------------------------- #

def conv_relu_pool(images_nchw, conv_w, conv_b):
    """Backbone stand-in: conv3x3(pad=1) + ReLU + adaptive avg-pool -> (B, Cout_pad) bf16."""
    B, Cin, H, W = images_nchw.shape
    Cout = conv_w.shape[-1]
    Cout_pad = _round_up(Cout, CO_TILE)
    n_co = Cout_pad // CO_TILE
    hp2, wp2 = H + 2, W + 2
    lp = hp2 * wp2
    # Flattened output-position count.  l_out = H*wp2 - 2 exactly covers the last valid
    # pixel ((H-1)*wp2 + W - 1) while keeping every shifted-slab read (max start offset
    # 2*wp2 + 2) inside the lp-long buffer, so NO tail padding is needed; every dropped
    # or garbage position lies in a width-halo column that the valid vector zeroes.
    l_out = H * wp2 - 2

    # Minimal staging: NCHW -> NHWC, zero border, free flatten, bf16 for half the DMA.
    # NOTE: Cin=4 on the lane axis is lane-sparse at this toy width; at real ResNet
    # widths (Cin >= 128) this channels-last layout is already lane-dense.
    x = jnp.transpose(images_nchw, (0, 2, 3, 1))                 # (B, H, W, Cin)
    x = jnp.pad(x, ((0, 0), (1, 1), (1, 1), (0, 0)))             # (B, H+2, W+2, Cin)
    x = x.reshape(B, lp, Cin).astype(jnp.bfloat16)               # (B, Lp, Cin)

    # Merged-tap weights: (3,3,Cin,Cout) -> (9*Cin, Cout_pad), tap-major / chan-minor,
    # matching the in-kernel concat order.  Padded output channels are zero.
    w2 = conv_w.reshape(9 * Cin, Cout)
    w2 = jnp.pad(w2, ((0, 0), (0, Cout_pad - Cout))).astype(jnp.bfloat16)
    b2 = jnp.pad(conv_b, (0, Cout_pad - Cout)).reshape(1, Cout_pad).astype(jnp.float32)

    # Pool vector (precomputed once): 1/(H*W) at valid columns, 0 at width-halo columns.
    valid = ((jnp.arange(l_out) % wp2) < W).astype(jnp.float32) / float(H * W)
    valid = valid.reshape(1, l_out)

    kernel = functools.partial(_conv_pool_kernel, wp2=wp2, l_out=l_out)

    pooled = pl.pallas_call(
        kernel,
        out_shape=jax.ShapeDtypeStruct((B, 1, Cout_pad), jnp.bfloat16),
        grid=(B, n_co),                          # both axes fully parallel (no reduce)
        in_specs=[
            pl.BlockSpec((1, lp, Cin), lambda b, co: (b, 0, 0)),
            pl.BlockSpec((9 * Cin, CO_TILE), lambda b, co: (0, co)),
            pl.BlockSpec((1, CO_TILE), lambda b, co: (0, co)),
            pl.BlockSpec((1, l_out), lambda b, co: (0, 0)),
        ],
        out_specs=pl.BlockSpec((1, 1, CO_TILE), lambda b, co: (b, 0, co)),
        compiler_params=pltpu.CompilerParams(
            dimension_semantics=("parallel", "parallel"),
            vmem_limit_bytes=VMEM_LIMIT),
    )(x, w2, b2, valid)
    return pooled.reshape(B, Cout_pad)           # bf16, zeros in padded channels


def embed_bn(pooled_pad, embed_w, embed_b, gamma, beta):
    """Linear(C_feat -> E) + BatchNorm1d over the batch.  Returns (B, E) f32."""
    B, C_pad = pooled_pad.shape
    C, E = embed_w.shape
    E_pad = _round_up(E, LANE)

    # Zero-pad parameters to lane-dense widths; padded rows/cols contribute zeros and
    # padded gamma/beta are zero, so padded output columns are exactly 0 (no NaNs).
    w = jnp.pad(embed_w, ((0, C_pad - C), (0, E_pad - E))).astype(jnp.bfloat16)
    b = jnp.pad(embed_b, (0, E_pad - E)).reshape(1, E_pad).astype(jnp.float32)
    g = jnp.pad(gamma, (0, E_pad - E)).reshape(1, E_pad).astype(jnp.float32)
    bt = jnp.pad(beta, (0, E_pad - E)).reshape(1, E_pad).astype(jnp.float32)

    def full(shape):
        return pl.BlockSpec(shape, lambda i: (0,) * len(shape))

    out = pl.pallas_call(
        _embed_bn_kernel,
        out_shape=jax.ShapeDtypeStruct((B, E_pad), jnp.float32),
        grid=(1,),
        in_specs=[full((B, C_pad)), full((C_pad, E_pad)), full((1, E_pad)),
                  full((1, E_pad)), full((1, E_pad))],
        out_specs=full((B, E_pad)),
        compiler_params=pltpu.CompilerParams(vmem_limit_bytes=VMEM_LIMIT),
    )(pooled_pad, w, b, g, bt)
    return out[:, :E]


def init_params(key, cin=4, cfeat=32, embed_size=16, k=3):
    k1, k2, k3, k4 = jax.random.split(key, 4)
    return dict(
        conv_w=jax.random.normal(k1, (k, k, cin, cfeat), jnp.float32) * 0.1,
        conv_b=jax.random.normal(k2, (cfeat,), jnp.float32) * 0.1,
        embed_w=jax.random.normal(k3, (cfeat, embed_size), jnp.float32) * 0.1,  # W^T
        embed_b=jax.random.normal(k4, (embed_size,), jnp.float32) * 0.1,
        bn_gamma=jnp.ones((embed_size,), jnp.float32),    # BatchNorm1d init
        bn_beta=jnp.zeros((embed_size,), jnp.float32),
    )


@jax.jit
def encoder_cnn_forward(images_nchw, params):
    pooled = conv_relu_pool(images_nchw, params["conv_w"], params["conv_b"])  # (B, Cp)
    return embed_bn(pooled, params["embed_w"], params["embed_b"],
                    params["bn_gamma"], params["bn_beta"])                    # (B, E)


# --------------------------------- Main ------------------------------------ #

if __name__ == "__main__":
    key = jax.random.PRNGKey(0)
    k_img, k_par = jax.random.split(key)

    B, Cin, H, W = 2, 4, 16, 16       # small NCHW images (stand-in for 3x224x224)
    embed_size = 16
    images = jax.random.normal(k_img, (B, Cin, H, W), jnp.float32)

    params = init_params(k_par, cin=Cin, cfeat=32, embed_size=embed_size)

    out = encoder_cnn_forward(images, params)
    jax.block_until_ready(out)
    assert out.shape == (B, embed_size) and out.dtype == jnp.float32
    assert bool(jnp.all(jnp.isfinite(out)))
    print("KERNEL_OK")
</pallas_src>

<mosaic_0001>
module attributes {stable_mosaic.version = 11 : i64} {
  func.func @_conv_pool_kernel(%arg0: i32, %arg1: i32, %arg2: memref<1x324x4xbf16, #tpu.memory_space<vmem>>, %arg3: memref<36x128xbf16, #tpu.memory_space<vmem>>, %arg4: memref<1x128xf32, #tpu.memory_space<vmem>>, %arg5: memref<1x286xf32, #tpu.memory_space<vmem>>, %arg6: memref<1x1x128xbf16, #tpu.memory_space<vmem>>) attributes {dimension_semantics = [#tpu.dimension_semantics<parallel>, #tpu.dimension_semantics<parallel>], iteration_bounds = array<i64: 2, 1>, scalar_prefetch = 0 : i64, scratch_operands = 0 : i64, tpu.core_type = #tpu.core_type<tc>, window_params = [{transform_indices = @transform_0, window_bounds = array<i64: 1, 324, 4>}, {transform_indices = @transform_1, window_bounds = array<i64: 36, 128>}, {transform_indices = @transform_2, window_bounds = array<i64: 1, 128>}, {pipeline_mode = #tpu.pipeline_mode<synchronous>, transform_indices = @transform_3, window_bounds = array<i64: 1, 286>}, {transform_indices = @transform_4, window_bounds = array<i64: 1, 1, 128>}]} {
    %c0 = arith.constant 0 : index
    %c0_0 = arith.constant 0 : index
    %c0_1 = arith.constant 0 : index
    %0 = vector.load %arg2[%c0, %c0_0, %c0_1] : memref<1x324x4xbf16, #tpu.memory_space<vmem>>, vector<1x324x4xbf16>
    %1 = vector.shape_cast %0 : vector<1x324x4xbf16> to vector<324x4xbf16>
    %2 = arith.extf %1 : vector<324x4xbf16> to vector<324x4xf32>
    %3 = vector.extract_strided_slice %2 {offsets = [0, 0], sizes = [286, 4], strides = [1, 1]} : vector<324x4xf32> to vector<286x4xf32>
    %4 = vector.extract_strided_slice %2 {offsets = [1, 0], sizes = [286, 4], strides = [1, 1]} : vector<324x4xf32> to vector<286x4xf32>
    %5 = vector.extract_strided_slice %2 {offsets = [2, 0], sizes = [286, 4], strides = [1, 1]} : vector<324x4xf32> to vector<286x4xf32>
    %6 = vector.extract_strided_slice %2 {offsets = [18, 0], sizes = [286, 4], strides = [1, 1]} : vector<324x4xf32> to vector<286x4xf32>
    %7 = vector.extract_strided_slice %2 {offsets = [19, 0], sizes = [286, 4], strides = [1, 1]} : vector<324x4xf32> to vector<286x4xf32>
    %8 = vector.extract_strided_slice %2 {offsets = [20, 0], sizes = [286, 4], strides = [1, 1]} : vector<324x4xf32> to vector<286x4xf32>
    %9 = vector.extract_strided_slice %2 {offsets = [36, 0], sizes = [286, 4], strides = [1, 1]} : vector<324x4xf32> to vector<286x4xf32>
    %10 = vector.extract_strided_slice %2 {offsets = [37, 0], sizes = [286, 4], strides = [1, 1]} : vector<324x4xf32> to vector<286x4xf32>
    %11 = vector.extract_strided_slice %2 {offsets = [38, 0], sizes = [286, 4], strides = [1, 1]} : vector<324x4xf32> to vector<286x4xf32>
    %12 = tpu.concatenate %3, %4, %5, %6, %7, %8, %9, %10, %11 in 1 : vector<286x4xf32>, vector<286x4xf32>, vector<286x4xf32>, vector<286x4xf32>, vector<286x4xf32>, vector<286x4xf32>, vector<286x4xf32>, vector<286x4xf32>, vector<286x4xf32> -> vector<286x36xf32>
    %13 = arith.truncf %12 : vector<286x36xf32> to vector<286x36xbf16>
    %c0_2 = arith.constant 0 : index
    %c0_3 = arith.constant 0 : index
    %14 = vector.load %arg3[%c0_2, %c0_3] : memref<36x128xbf16, #tpu.memory_space<vmem>>, vector<36x128xbf16>
    %cst = arith.constant dense<0.000000e+00> : vector<286x128xf32>
    %15 = tpu.matmul %13, %14, %cst {dimension_numbers = #tpu.dot_dimension_numbers<[1], [0], [0], [1], [0, 0, 1, 1], [], []>} : vector<286x36xbf16>, vector<36x128xbf16>, vector<286x128xf32> -> vector<286x128xf32>
    %c0_4 = arith.constant 0 : index
    %c0_5 = arith.constant 0 : index
    %16 = vector.load %arg4[%c0_4, %c0_5] : memref<1x128xf32, #tpu.memory_space<vmem>>, vector<1x128xf32>
    %17 = vector.broadcast %16 : vector<1x128xf32> to vector<286x128xf32>
    %18 = arith.addf %15, %17 : vector<286x128xf32>
    %cst_6 = arith.constant 0.000000e+00 : f32
    %19 = vector.broadcast %cst_6 : f32 to vector<286x128xf32>
    %20 = arith.maximumf %18, %19 : vector<286x128xf32>
    %c0_7 = arith.constant 0 : index
    %c0_8 = arith.constant 0 : index
    %21 = vector.load %arg5[%c0_7, %c0_8] : memref<1x286xf32, #tpu.memory_space<vmem>>, vector<1x286xf32>
    %cst_9 = arith.constant dense<0.000000e+00> : vector<1x128xf32>
    %22 = tpu.matmul %21, %20, %cst_9 {dimension_numbers = #tpu.dot_dimension_numbers<[1], [0], [0], [1], [0, 0, 1, 1], [], []>} : vector<1x286xf32>, vector<286x128xf32>, vector<1x128xf32> -> vector<1x128xf32>
    %23 = arith.truncf %22 : vector<1x128xf32> to vector<1x128xbf16>
    %c0_10 = arith.constant 0 : index
    %c0_11 = arith.constant 0 : index
    %c0_12 = arith.constant 0 : index
    %24 = vector.load %arg6[%c0_10, %c0_11, %c0_12] : memref<1x1x128xbf16, #tpu.memory_space<vmem>>, vector<1x1x128xbf16>
    %25 = vector.shape_cast %24 : vector<1x1x128xbf16> to vector<1x128xbf16>
    %26 = vector.shape_cast %23 : vector<1x128xbf16> to vector<1x1x128xbf16>
    tpu.vector_store %arg6[%c0_10, %c0_11, %c0_12], %26 {strides = array<i32>} : memref<1x1x128xbf16, #tpu.memory_space<vmem>>, vector<1x1x128xbf16>,
    return
  }
  func.func @transform_0(%arg0: i32, %arg1: i32) -> (i32, i32, i32) {
    %c0_i32 = arith.constant 0 : i32
    %c0_i32_0 = arith.constant 0 : i32
    %c0_i32_1 = arith.constant 0 : i32
    return %arg0, %c0_i32, %c0_i32_0 : i32, i32, i32
  }
  func.func @transform_1(%arg0: i32, %arg1: i32) -> (i32, i32) {
    %c0_i32 = arith.constant 0 : i32
    %c0_i32_0 = arith.constant 0 : i32
    return %c0_i32, %arg1 : i32, i32
  }
  func.func @transform_2(%arg0: i32, %arg1: i32) -> (i32, i32) {
    %c0_i32 = arith.constant 0 : i32
    %c0_i32_0 = arith.constant 0 : i32
    return %c0_i32, %arg1 : i32, i32
  }
  func.func @transform_3(%arg0: i32, %arg1: i32) -> (i32, i32) {
    %c0_i32 = arith.constant 0 : i32
    %c0_i32_0 = arith.constant 0 : i32
    %c0_i32_1 = arith.constant 0 : i32
    return %c0_i32, %c0_i32_0 : i32, i32
  }
  func.func @transform_4(%arg0: i32, %arg1: i32) -> (i32, i32, i32) {
    %c0_i32 = arith.constant 0 : i32
    %c0_i32_0 = arith.constant 0 : i32
    return %arg0, %c0_i32, %arg1 : i32, i32, i32
  }
}

module attributes {stable_mosaic.version = 11 : i64} {
  func.func @_embed_bn_kernel(%arg0: i32, %arg1: memref<2x128xbf16, #tpu.memory_space<vmem>>, %arg2: memref<128x128xbf16, #tpu.memory_space<vmem>>, %arg3: memref<1x128xf32, #tpu.memory_space<vmem>>, %arg4: memref<1x128xf32, #tpu.memory_space<vmem>>, %arg5: memref<1x128xf32, #tpu.memory_space<vmem>>, %arg6: memref<2x128xf32, #tpu.memory_space<vmem>>) attributes {dimension_semantics = [#tpu.dimension_semantics<arbitrary>], iteration_bounds = array<i64: 1>, scalar_prefetch = 0 : i64, scratch_operands = 0 : i64, tpu.core_type = #tpu.core_type<tc>, window_params = [{pipeline_mode = #tpu.pipeline_mode<synchronous>, transform_indices = @transform_0, window_bounds = array<i64: 2, 128>}, {pipeline_mode = #tpu.pipeline_mode<synchronous>, transform_indices = @transform_1, window_bounds = array<i64: 128, 128>}, {pipeline_mode = #tpu.pipeline_mode<synchronous>, transform_indices = @transform_2, window_bounds = array<i64: 1, 128>}, {pipeline_mode = #tpu.pipeline_mode<synchronous>, transform_indices = @transform_3, window_bounds = array<i64: 1, 128>}, {pipeline_mode = #tpu.pipeline_mode<synchronous>, transform_indices = @transform_4, window_bounds = array<i64: 1, 128>}, {pipeline_mode = #tpu.pipeline_mode<synchronous>, transform_indices = @transform_5, window_bounds = array<i64: 2, 128>}]} {
    %c0 = arith.constant 0 : index
    %c0_0 = arith.constant 0 : index
    %0 = vector.load %arg1[%c0, %c0_0] : memref<2x128xbf16, #tpu.memory_space<vmem>>, vector<2x128xbf16>
    %c0_1 = arith.constant 0 : index
    %c0_2 = arith.constant 0 : index
    %1 = vector.load %arg2[%c0_1, %c0_2] : memref<128x128xbf16, #tpu.memory_space<vmem>>, vector<128x128xbf16>
    %cst = arith.constant dense<0.000000e+00> : vector<2x128xf32>
    %2 = tpu.matmul %0, %1, %cst {dimension_numbers = #tpu.dot_dimension_numbers<[1], [0], [0], [1], [0, 0, 1, 1], [], []>} : vector<2x128xbf16>, vector<128x128xbf16>, vector<2x128xf32> -> vector<2x128xf32>
    %c0_3 = arith.constant 0 : index
    %c0_4 = arith.constant 0 : index
    %3 = vector.load %arg3[%c0_3, %c0_4] : memref<1x128xf32, #tpu.memory_space<vmem>>, vector<1x128xf32>
    %4 = vector.broadcast %3 : vector<1x128xf32> to vector<2x128xf32>
    %5 = arith.addf %2, %4 : vector<2x128xf32>
    %cst_5 = arith.constant dense<0.000000e+00> : vector<128xf32>
    %6 = vector.multi_reduction <add>, %5, %cst_5 [0] : vector<2x128xf32> to vector<128xf32>
    %7 = vector.shape_cast %6 : vector<128xf32> to vector<1x128xf32>
    %cst_6 = arith.constant 2.000000e+00 : f32
    %8 = vector.broadcast %cst_6 : f32 to vector<1x128xf32>
    %9 = arith.divf %7, %8 : vector<1x128xf32>
    %10 = arith.mulf %5, %5 : vector<2x128xf32>
    %cst_7 = arith.constant dense<0.000000e+00> : vector<128xf32>
    %11 = vector.multi_reduction <add>, %10, %cst_7 [0] : vector<2x128xf32> to vector<128xf32>
    %12 = vector.shape_cast %11 : vector<128xf32> to vector<1x128xf32>
    %cst_8 = arith.constant 2.000000e+00 : f32
    %13 = vector.broadcast %cst_8 : f32 to vector<1x128xf32>
    %14 = arith.divf %12, %13 : vector<1x128xf32>
    %15 = arith.mulf %9, %9 : vector<1x128xf32>
    %16 = arith.subf %14, %15 : vector<1x128xf32>
    %cst_9 = arith.constant 0.000000e+00 : f32
    %17 = vector.broadcast %cst_9 : f32 to vector<1x128xf32>
    %18 = arith.maximumf %16, %17 : vector<1x128xf32>
    %19 = vector.broadcast %9 : vector<1x128xf32> to vector<2x128xf32>
    %20 = arith.subf %5, %19 : vector<2x128xf32>
    %cst_10 = arith.constant 9.99999974E-6 : f32
    %21 = vector.broadcast %cst_10 : f32 to vector<1x128xf32>
    %22 = arith.addf %18, %21 : vector<1x128xf32>
    %23 = math.rsqrt %22 : vector<1x128xf32>
    %24 = vector.broadcast %23 : vector<1x128xf32> to vector<2x128xf32>
    %25 = arith.mulf %20, %24 : vector<2x128xf32>
    %c0_11 = arith.constant 0 : index
    %c0_12 = arith.constant 0 : index
    %26 = vector.load %arg4[%c0_11, %c0_12] : memref<1x128xf32, #tpu.memory_space<vmem>>, vector<1x128xf32>
    %27 = vector.broadcast %26 : vector<1x128xf32> to vector<2x128xf32>
    %28 = arith.mulf %25, %27 : vector<2x128xf32>
    %c0_13 = arith.constant 0 : index
    %c0_14 = arith.constant 0 : index
    %29 = vector.load %arg5[%c0_13, %c0_14] : memref<1x128xf32, #tpu.memory_space<vmem>>, vector<1x128xf32>
    %30 = vector.broadcast %29 : vector<1x128xf32> to vector<2x128xf32>
    %31 = arith.addf %28, %30 : vector<2x128xf32>
    %c0_15 = arith.constant 0 : index
    %c0_16 = arith.constant 0 : index
    %32 = vector.load %arg6[%c0_15, %c0_16] : memref<2x128xf32, #tpu.memory_space<vmem>>, vector<2x128xf32>
    tpu.vector_store %arg6[%c0_15, %c0_16], %31 {strides = array<i32>} : memref<2x128xf32, #tpu.memory_space<vmem>>, vector<2x128xf32>,
    return
  }
  func.func @transform_0(%arg0: i32) -> (i32, i32) {
    %c0_i32 = arith.constant 0 : i32
    %c0_i32_0 = arith.constant 0 : i32
    %c0_i32_1 = arith.constant 0 : i32
    return %c0_i32, %c0_i32_0 : i32, i32
  }
  func.func @transform_1(%arg0: i32) -> (i32, i32) {
    %c0_i32 = arith.constant 0 : i32
    %c0_i32_0 = arith.constant 0 : i32
    %c0_i32_1 = arith.constant 0 : i32
    return %c0_i32, %c0_i32_0 : i32, i32
  }
  func.func @transform_2(%arg0: i32) -> (i32, i32) {
    %c0_i32 = arith.constant 0 : i32
    %c0_i32_0 = arith.constant 0 : i32
    %c0_i32_1 = arith.constant 0 : i32
    return %c0_i32, %c0_i32_0 : i32, i32
  }
  func.func @transform_3(%arg0: i32) -> (i32, i32) {
    %c0_i32 = arith.constant 0 : i32
    %c0_i32_0 = arith.constant 0 : i32
    %c0_i32_1 = arith.constant 0 : i32
    return %c0_i32, %c0_i32_0 : i32, i32
  }
  func.func @transform_4(%arg0: i32) -> (i32, i32) {
    %c0_i32 = arith.constant 0 : i32
    %c0_i32_0 = arith.constant 0 : i32
    %c0_i32_1 = arith.constant 0 : i32
    return %c0_i32, %c0_i32_0 : i32, i32
  }
  func.func @transform_5(%arg0: i32) -> (i32, i32) {
    %c0_i32 = arith.constant 0 : i32
    %c0_i32_0 = arith.constant 0 : i32
    %c0_i32_1 = arith.constant 0 : i32
    return %c0_i32, %c0_i32_0 : i32, i32
  }
}

</mosaic_0001>

<bundles_post_ra>
// kernel: encoder_cnn_forward.3
= control target key start
LH: loop header
LB: loop body
LE: loop exit
PB: predicated region body
PF: predicated region fallthrough
CT: control target
= control target key end

     0   :  { %v268_v1 = vmov 0.0   ;;  %vm269_vm0 = vmmov 0   ;;  %s349_s0 = inlined_call_operand.vmem [shape: bf16[2,128], index: 0, kind: input, shape index: {}]   ;;  %s350_s1 = inlined_call_operand.vmem [shape: bf16[128,128], index: 1, kind: input, shape index: {}]   ;;  %s351_s2 = inlined_call_operand.vmem [shape: f32[1,128], index: 2, kind: input, shape index: {}]   ;;  %s352_s3 = inlined_call_operand.vmem [shape: f32[1,128], index: 3, kind: input, shape index: {}]   ;;  %s353_s4 = inlined_call_operand.vmem [shape: f32[1,128], index: 4, kind: input, shape index: {}]   ;;  %s354_s5 = inlined_call_operand.hbm [shape: f32[2,128], index: 5, kind: output, shape index: {}]  }
   0x1   :  { %v234_v0 = vld [vmem:[%s350_s1] sm:$0xff]   ;;  %211 = vmatprep.subr.bf16.mxu0 %v268_v1  ;;  %v235_v2 = vld [vmem:[%s350_s1 + $0x8] sm:$0xff]   ;;  %227 = vmatprep.mubr.msk.bf16.mxu0 %vm269_vm0, %v268_v1  ;;  %v236_v3 = vld [vmem:[%s350_s1 + $0x10] sm:$0xff]  }
   0x2   :  { %212 = vmatpush3.bf16.msra.mxu0 %v234_v0 }
   0x3   :  { %213 = vmatprep.subr.bf16.mxu0 %v268_v1 }
   0x6   :  { %214 = vmatpush3.bf16.msra.mxu0 %v235_v2 }
   0x7   :  { %215 = vmatprep.subr.bf16.mxu0 %v268_v1 }
   0x8   :  { %10 = vsyncpa [#allocation3], 0  ;;  %v237_v4 = vld [vmem:[%s350_s1 + $0x18] sm:$0xff]   ;;  %v238_v5 = vld [vmem:[%s350_s1 + $0x20] sm:$0xff]   ;;  %vm134_vm1 = vcmask 1041408   ;;  %s270_s14 = smov [#allocation2]  }
   0x9   :  { %v239_v6 = vld [vmem:[%s350_s1 + $0x28] sm:$0xff]   ;;  %v240_v7 = vld [vmem:[%s350_s1 + $0x30] sm:$0xff]   ;;  %v241_v8 = vld [vmem:[%s350_s1 + $0x38] sm:$0xff]   ;;  %s183_s15 = sshll.u32 %s270_s14, 4  ;;  %s184_s15 = int_to_ptr.vmem [resolvable:$true] %s183_s15 }
   0xa   :  { %216 = vmatpush3.bf16.msra.mxu0 %v236_v3  ;;  %v22_v9 = vld [vmem:[%s349_s0] sm:$0x1]  ;;  %s244_s16 = scalar_lea.vmem %s184_s15, 32  ;;  %p249_p1 = scmp.lt.s32.totalorder %s184_s15, %s184_s15 }
   0xb   :  { %217 = vmatprep.subr.bf16.mxu0 %v268_v1  ;;  %v191_v10 = vld [vmem:[%s351_s2] ss:$0 sm:$0xff]  ;;  %p245_p0 = scmp.ne.s32.totalorder %s184_s15, %s244_s16  ;;  %p250_p2 = scmp.lt.s32.totalorder %s244_s16, %s244_s16 }
   0xc   :  { %v200_v39 = vld [vmem:[%s352_s3] ss:$0 sm:$0xff] }
   0xd   :  { %v201_v41 = vld [vmem:[%s353_s4] ss:$0 sm:$0xff]  ;;  %p251_p3 = por %p250_p2, %p249_p1 }
   0xe   :  { %218 = vmatpush3.bf16.msra.mxu0 %v237_v4 }
   0xf   :  { %219 = vmatprep.subr.bf16.mxu0 %v268_v1  ;;  %p252_p4 = pnand %p251_p3, %p245_p0 }
  0x12   :  { %220 = vmatpush3.bf16.msra.mxu0 %v238_v5 }
  0x13   :  { %221 = vmatprep.subr.bf16.mxu0 %v268_v1 }
  0x16   :  { %222 = vmatpush3.bf16.msra.mxu0 %v239_v6 }
  0x17   :  { %223 = vmatprep.subr.bf16.mxu0 %v268_v1 }
  0x1a   :  { %224 = vmatpush3.bf16.msra.mxu0 %v240_v7 }
  0x1b   :  { %225 = vmatprep.subr.bf16.mxu0 %v268_v1 }
  0x1e   :  { %226 = vmatpush3.bf16.msra.mxu0 %v241_v8 }
  0x21   :  { %228 = vmatmul.mubr.bf16.vlgmr.msra.gmra.mrb[0].mxu0 %v22_v9 }
  0xf4   :  { %v128_v11 = vpop.f32.mrb[0].mxu0 }
  0xf5   :  { %v129_v12 = vadd.f32 %v191_v10, %v128_v11  ;;  %v229_v13 = vpop.f32.mrb[1].mxu0 }
  0xf6   :  { %v131_v14 = vpop.f32.mrb[2].mxu0 }
  0xf7   :  { %v135_v15 = vsel %vm134_vm1, %v129_v12, 0.0  ;;  %v144_v16 = vmul.f32 %v129_v12, %v129_v12  ;;  %v230_v17 = vpop.f32.mrb[3].mxu0 }
  0xf8   :  { %v136_v18 = vrot.slane %v135_v15, 4 }
  0xf9   :  { %v145_v19 = vsel %vm134_vm1, %v144_v16, 0.0 }
  0xfa   :  { %v137_v20 = vadd.f32 %v136_v18, %v135_v15  ;;  %v146_v21 = vrot.slane %v145_v19, 4 }
  0xfc   :  { %v138_v22 = vrot.slane %v137_v20, 2  ;;  %v147_v23 = vadd.f32 %v146_v21, %v145_v19 }
  0xfe   :  { %v139_v24 = vadd.f32 %v138_v22, %v137_v20  ;;  %v148_v25 = vrot.slane %v147_v23, 2 }
 0x100   :  { %v140_v26 = vrot.slane %v139_v24, 1  ;;  %v149_v27 = vadd.f32 %v148_v25, %v147_v23 }
 0x102   :  { %v141_v28 = vadd.f32 %v140_v26, %v139_v24  ;;  %v150_v29 = vrot.slane %v149_v27, 1 }
 0x104   :  { %v143_v30 = vmul.f32 0.5, %v141_v28  ;;  %v151_v31 = vadd.f32 %v150_v29, %v149_v27 }
 0x106   :  { %v152_v32 = vmul.f32 0.5, %v151_v31  ;;  %v153_v33 = vmul.f32 %v143_v30, %v143_v30  ;;  %v156_v37 = vsub.f32 %v129_v12, %v143_v30 }
 0x108   :  { %v154_v34 = vsub.f32 %v152_v32, %v153_v33 }
 0x10a   :  { %v155_v35 = vmax.f32 %v154_v34, 0.0 }
 0x10c   :  { %v157_v36 = vadd.f32 1e-05, %v155_v35 }
 0x10e   :  { %242 = vrsqrt.f32 %v157_v36 }
 0x118   :  { %v243_v38 = vpop.eup %242 }
 0x119   :  { %v159_v40 = vmul.f32 %v243_v38, %v156_v37 }
 0x11b   :  { %v167_v42 = vmul.f32 %v200_v39, %v159_v40 }
 0x11d   :  { %v175_v43 = vadd.f32 %v201_v41, %v167_v42 }
 0x11f   :  { %176 = vst [vmem:[#allocation2] sm:$0x3] %v175_v43 }
 0x120   :  { %255 = shalt.err (!%p252_p4)
}
 0x121   :  { %s256_s18 = scalar_lea.hbm %s354_s5, 32 }
 0x122   :  { %p257_p5 = scmp.ne.s32.totalorder %s354_s5, %s256_s18  ;;  %p260_p6 = scmp.lt.u32.totalorder %s256_s18, %s354_s5 }
 0x124   :  { %p262_p7 = pnand %p260_p6, %p257_p5 }
 0x126   :  { %265 = shalt.err (!%p262_p7)
}
 0x127   :  { %186 = dma.vmem_to_hbm [thread:$0]  %s184_s15, 32, %s354_s5, [#allocation3]  }
 0x128   :  { %266 = dma.done.wait [#allocation3], 32  }
 0x129   :  { %267 = vsyncadd [#allocation3], 4294967264 }
 0x12a   :  { %190 = vsyncpa [#allocation3], 1 }

// kernel: encoder_cnn_forward.2
= control target key start
LH: loop header
LB: loop body
LE: loop exit
PB: predicated region body
PF: predicated region fallthrough
CT: control target
= control target key end

     0   :  { %s3663_s15 = smov 0   ;;  %s3665_s16 = smov 0   ;;  %s5715_s0 = inlined_call_operand.vmem [shape: bf16[2,324,4], index: 0, kind: input, shape index: {}]   ;;  %s5716_s1 = inlined_call_operand.vmem [shape: bf16[36,128], index: 1, kind: input, shape index: {}]   ;;  %s5717_s2 = inlined_call_operand.vmem [shape: f32[1,128], index: 2, kind: input, shape index: {}]   ;;  %s5718_s3 = inlined_call_operand.vmem [shape: f32[1,286], index: 3, kind: input, shape index: {}]   ;;  %s5719_s4 = inlined_call_operand.vmem [shape: bf16[2,1,128], index: 4, kind: output, shape index: {}]  }
   0x1   :  { %s3667_s17 = smov 0  }
   0x2 LB: > { %s26_s18 = sadd.s32 1, %s3620_s16  ;;  %p2561_p0 = scmp.ge.s32.totalorder %s3624_s17, 1  ;;  %s3624_s17 = sphi %s3667_s17, %s14_s17   ;;  %s3620_s16 = sphi %s3665_s16, %s5828_s16   ;;  %s3616_s15 = sphi %s3663_s15, %s5827_s15  }
   0x3   : > { %p28_p1 = scmp.ge.s32.totalorder %s26_s18, 2  ;;  %p193_p2 = scmp.lt.s32.totalorder %s3624_s17, 3 }
   0x5   : > { %s5830_s18 = smov (%p28_p1, %s26_s18), 0  ;;  %p194_p3 = pnand %p2561_p0, %p193_p2 }
   0x7   : > { %197 = sbr.rel (%p194_p3) target bundleno = 882 (0x372), region = 36 }
   0xe   : > { %p227_p4 = scmp.lt.s32.totalorder %s3616_s15, 1  ;;  %vm544_vm0 = vcmask 1045504   ;;  %vm364_vm1 = vcmask 1046528   ;;  %vm839_vm2 = vcmask 1044480   ;;  %s3626_s23 = smov 8   ;;  %vm1021_vm3 = vcmask 1043456  }
   0xf   : > { %s3627_s24 = smov 4   ;;  %s3628_s25 = smov 12   ;;  %vm1317_vm4 = vcmask 1042432   ;;  %vm1499_vm5 = vcmask 1041408   ;;  %vm1681_vm6 = vcmask 31744   ;;  %vm1718_vm7 = vcmask 64512  }
  0x10   : > { %s5832_s15 = smov (!%p227_p4, %s3616_s15), 1  ;;  %s3629_s28 = smov 16   ;;  %vm1755_vm8 = vcmask 97280   ;;  %vm1792_vm9 = vcmask 130048   ;;  %vm1829_vm10 = vcmask 162816   ;;  %vm1866_vm11 = vcmask 195584  }
  0x11   : > { %s2842_s19 = smul.u32 164, %s5832_s15  ;;  %s3630_s5 = smov 20   ;;  %vm1903_vm12 = vcmask 228352   ;;  %vm1940_vm13 = vcmask 261120   ;;  %vm2022_vm14 = vcmask 293888   ;;  %vm3635_vm15 = vmmov 0  }
  0x12   : > { %s3631_s8 = smov 24   ;;  %s3632_s9 = smov 28  }
  0x13   : > { %s3687_s22 = scalar_lea.vmem %s5715_s0, %s2842_s19  ;;  %s3633_s10 = smov 32  }
  0x14   : > { %v2590_v0 = vld [vmem:[%s3687_s22] sm:$0xff]   ;;  %v2669_v1 = vld [vmem:[%s3687_s22 + $0x8] sm:$0xff]   ;;  %v2670_v2 = vld [vmem:[%s3687_s22 + $0x10] sm:$0xff]   ;;  %s244_s21 = scalar_lea.vmem %s5719_s4, %s5832_s15 }
  0x15   : > { %v3692_v3 = vunpack.c.l.bf16 %v2590_v0  ;;  %v3694_v4 = vunpack.c.h.bf16 %v2590_v0  ;;  %v3696_v5 = vunpack.c.l.bf16 %v2669_v1  ;;  %v3698_v6 = vunpack.c.h.bf16 %v2669_v1  ;;  %v2671_v7 = vld [vmem:[%s3687_s22 + $0x18] sm:$0xff]   ;;  %v3746_v45 = vld [vmem:[%s3687_s22 + $0x20] sm:$0xff]  }
  0x16   : > { %v3701_v8 = vunpack.c.l.bf16 %v2670_v2  ;;  %v3703_v9 = vunpack.c.h.bf16 %v2670_v2  ;;  %v3705_v10 = vunpack.c.l.bf16 %v2671_v7  ;;  %v3743_v44 = vunpack.c.h.bf16 %v2671_v7  ;;  %v3599_v1 = vld [vmem:[%s5716_s1] sm:$0xff]  }
  0x17   : > { %v545_v11 = vrot.slane %v3692_v3, 2  ;;  %v546_v12 = vrot.slane %v3694_v4, 2  ;;  %v548_v13 = vrot.slane %v3696_v5, 2  ;;  %v365_v14 = vrot.slane %v3692_v3, 1  ;;  %2749 = vmatprep.subr.bf16.mxu0 %v3599_v1 }
  0x18   : > { %v366_v15 = vrot.slane %v3694_v4, 1  ;;  %v368_v16 = vrot.slane %v3696_v5, 1  ;;  %v550_v17 = vrot.slane %v3698_v6, 2  ;;  %v552_v18 = vrot.slane %v3701_v8, 2  ;;  %2750 = vmatpush3.bf16.msra.mxu0 %v3599_v1 }
  0x19   : > { %v547_v19 = vsel %vm544_vm0, %v545_v11, %v546_v12  ;;  %v549_v20 = vsel %vm544_vm0, %v546_v12, %v548_v13  ;;  %v370_v21 = vrot.slane %v3698_v6, 1  ;;  %v372_v22 = vrot.slane %v3701_v8, 1 }
  0x1a   : > { %v2889_v23 = vpack.i.bf16 %v549_v20, %v547_v19  ;;  %v367_v24 = vsel %vm364_vm1, %v365_v14, %v366_v15  ;;  %v369_v25 = vsel %vm364_vm1, %v366_v15, %v368_v16  ;;  %v551_v26 = vsel %vm544_vm0, %v548_v13, %v550_v17 }
  0x1b   : > { %v2879_v27 = vpack.i.bf16 %v369_v25, %v367_v24  ;;  %v553_v28 = vsel %vm544_vm0, %v550_v17, %v552_v18  ;;  %v371_v29 = vsel %vm364_vm1, %v368_v16, %v370_v21  ;;  %v373_v30 = vsel %vm364_vm1, %v370_v21, %v372_v22 }
  0x1c   : > { %2890 = vrot.lane.b32.xlu1 %v2889_v23, %s3626_s23  ;;  %v2894_v31 = vpack.i.bf16 %v553_v28, %v551_v26  ;;  %v554_v32 = vrot.slane %v3703_v9, 2  ;;  %v556_v33 = vrot.slane %v3705_v10, 2  ;;  %v2884_v34 = vpack.i.bf16 %v373_v30, %v371_v29  ;;  %v3807_v28 = vld [vmem:[%s5716_s1 + $0x10] ss:$0 sps:$4 sm:$0x33]  }
  0x1d   : > { %2880 = vrot.lane.b32.xlu0 %v2879_v27, %s3627_s24  ;;  %v843_v35 = vrot.slane %v3701_v8, 3  ;;  %v845_v36 = vrot.slane %v3703_v9, 3  ;;  %v847_v37 = vrot.slane %v3705_v10, 3  ;;  %v840_v40 = vrot.slane %v3696_v5, 3 }
  0x1e   : > { %v555_v38 = vsel %vm544_vm0, %v552_v18, %v554_v32  ;;  %v557_v39 = vsel %vm544_vm0, %v554_v32, %v556_v33  ;;  %v841_v41 = vrot.slane %v3698_v6, 3  ;;  %v1025_v48 = vrot.slane %v3701_v8, 4  ;;  %v3600_v18 = vld [vmem:[%s5716_s1 + $0x8] sm:$0xff]  }
  0x1f   : > { %v3740_v42 = vpack.i.bf16 %v557_v39, %v555_v38  ;;  %v846_v43 = vsel %vm839_vm2, %v843_v35, %v845_v36  ;;  %v848_v46 = vsel %vm839_vm2, %v845_v36, %v847_v37  ;;  %v1027_v49 = vrot.slane %v3703_v9, 4  ;;  %2751 = vmatprep.subr.bf16.mxu0 %v3600_v18 }
  0x20   : > { %2895 = vrot.lane.b32.xlu1 %v2894_v31, %s3626_s23  ;;  %v842_v47 = vsel %vm839_vm2, %v840_v40, %v841_v41  ;;  %v844_v50 = vsel %vm839_vm2, %v841_v41, %v843_v35  ;;  %v1029_v51 = vrot.slane %v3705_v10, 4  ;;  %v1022_v52 = vrot.slane %v3696_v5, 4  ;;  %2752 = vmatpush3.bf16.msra.mxu0 %v3600_v18 }
  0x21   : > { %2885 = vrot.lane.b32.xlu0 %v2884_v34, %s3627_s24  ;;  %v1023_v53 = vrot.slane %v3698_v6, 4  ;;  %v3761_v54 = vunpack.c.l.bf16 %v3746_v45  ;;  %v2914_v55 = vpack.i.bf16 %v848_v46, %v846_v43  ;;  %v2909_v56 = vpack.i.bf16 %v844_v50, %v842_v47  ;;  %2841 = vmatprep.subr.msk.bf16.mxu0 %vm1499_vm5, %v3807_v28 }
  0x22   : > { %v1028_v57 = vsel %vm1021_vm3, %v1025_v48, %v1027_v49  ;;  %v1031_v58 = vrot.slane %v3743_v44, 4  ;;  %v1030_v59 = vsel %vm1021_vm3, %v1027_v49, %v1029_v51  ;;  %v1321_v63 = vrot.slane %v3705_v10, 5 }
  0x23   : > { %v1024_v60 = vsel %vm1021_vm3, %v1022_v52, %v1023_v53  ;;  %v1026_v61 = vsel %vm1021_vm3, %v1023_v53, %v1025_v48  ;;  %v1033_v62 = vrot.slane %v3761_v54, 4  ;;  %v1323_v0 = vrot.slane %v3743_v44, 5 }
  0x24   : > { %2905 = vrot.lane.b32.xlu1 %v3740_v42, %s3628_s25  ;;  %v2924_v2 = vpack.i.bf16 %v1030_v59, %v1028_v57  ;;  %v2919_v7 = vpack.i.bf16 %v1026_v61, %v1024_v60  ;;  %v1325_v11 = vrot.slane %v3761_v54, 5  ;;  %v1032_v12 = vsel %vm1021_vm3, %v1029_v51, %v1031_v58 }
  0x25   : > { %2900 = vrot.lane.b32.xlu0 %v2894_v31, %s3628_s25  ;;  %v1034_v13 = vsel %vm1021_vm3, %v1031_v58, %v1033_v62  ;;  %v1318_v14 = vrot.slane %v3701_v8, 5  ;;  %v1319_v15 = vrot.slane %v3703_v9, 5  ;;  %v1324_v16 = vsel %vm1317_vm4, %v1321_v63, %v1323_v0 }
  0x26   : > { %v374_v17 = vrot.slane %v3703_v9, 1  ;;  %v3792_v19 = vpack.i.bf16 %v1034_v13, %v1032_v12  ;;  %v1326_v20 = vsel %vm1317_vm4, %v1323_v0, %v1325_v11  ;;  %v376_v21 = vrot.slane %v3705_v10, 1 }
  0x27   : > { %v1500_v23 = vrot.slane %v3701_v8, 6  ;;  %v1320_v24 = vsel %vm1317_vm4, %v1318_v14, %v1319_v15  ;;  %v1322_v25 = vsel %vm1317_vm4, %v1319_v15, %v1321_v63  ;;  %v1501_v26 = vrot.slane %v3703_v9, 6 }
  0x28   : > { %2915 = vrot.lane.b32.xlu1 %v2914_v55, %s3629_s28  ;;  %v1503_v27 = vrot.slane %v3705_v10, 6  ;;  %v2944_v29 = vpack.i.bf16 %v1326_v20, %v1324_v16  ;;  %v2939_v30 = vpack.i.bf16 %v1322_v25, %v1320_v24  ;;  %v375_v31 = vsel %vm364_vm1, %v372_v22, %v374_v17  ;;  %v2673_v22 = vld [vmem:[%s3687_s22 + $0x28] sm:$0xff]  }
  0x29   : > { %2910 = vrot.lane.b32.xlu0 %v2909_v56, %s3629_s28  ;;  %v377_v32 = vsel %vm364_vm1, %v374_v17, %v376_v21  ;;  %v1502_v34 = vsel %vm1499_vm5, %v1500_v23, %v1501_v26  ;;  %v378_v36 = vrot.slane %v3743_v44, 1  ;;  %v380_v38 = vrot.slane %v3761_v54, 1 }
  0x2a   : > { %v1504_v35 = vsel %vm1499_vm5, %v1501_v26, %v1503_v27  ;;  %v1505_v39 = vrot.slane %v3743_v44, 6  ;;  %v1507_v40 = vrot.slane %v3761_v54, 6  ;;  %v2954_v41 = vpack.i.bf16 %v377_v32, %v375_v31 }
  0x2b   : > { %v2949_v43 = vpack.i.bf16 %v1504_v35, %v1502_v34  ;;  %v558_v46 = vrot.slane %v3743_v44, 2  ;;  %v560_v47 = vrot.slane %v3761_v54, 2  ;;  %v379_v48 = vsel %vm364_vm1, %v376_v21, %v378_v36 }
  0x2c   : > { %2925 = vrot.lane.b32.xlu1 %v2924_v2, %s3630_s5  ;;  %v381_v49 = vsel %vm364_vm1, %v378_v36, %v380_v38  ;;  %v3834_v50 = vunpack.c.h.bf16 %v3746_v45  ;;  %v3836_v51 = vunpack.c.l.bf16 %v2673_v22  ;;  %v1506_v52 = vsel %vm1499_vm5, %v1503_v27, %v1505_v39 }
  0x2d   : > { %2920 = vrot.lane.b32.xlu0 %v2919_v7, %s3630_s5  ;;  %v1508_v53 = vsel %vm1499_vm5, %v1505_v39, %v1507_v40  ;;  %v2964_v55 = vpack.i.bf16 %v381_v49, %v379_v48  ;;  %v559_v56 = vsel %vm544_vm0, %v556_v33, %v558_v46  ;;  %v561_v57 = vsel %vm544_vm0, %v558_v46, %v560_v47  ;;  %v2674_v7 = vld [vmem:[%s3687_s22 + $0x30] sm:$0xff]  }
  0x2e   : > { %v2959_v45 = vpack.i.bf16 %v1508_v53, %v1506_v52  ;;  %v562_v58 = vrot.slane %v3834_v50, 2  ;;  %v564_v59 = vrot.slane %v3836_v51, 2  ;;  %v2974_v60 = vpack.i.bf16 %v561_v57, %v559_v56 }
  0x2f   : > { %v851_v61 = vrot.slane %v3761_v54, 3  ;;  %v853_v63 = vrot.slane %v3834_v50, 3  ;;  %v849_v33 = vrot.slane %v3743_v44, 3  ;;  %v1035_v12 = vrot.slane %v3834_v50, 4 }
  0x30   : > { %2935 = vrot.lane.b32.xlu1 %v3792_v19, %s3631_s8  ;;  %v563_v0 = vsel %vm544_vm0, %v560_v47, %v562_v58  ;;  %v565_v1 = vsel %vm544_vm0, %v562_v58, %v564_v59  ;;  %v1037_v18 = vrot.slane %v3836_v51, 4  ;;  %v3876_v20 = vunpack.c.h.bf16 %v2673_v22  ;;  %v2675_v58 = vld [vmem:[%s3687_s22 + $0x38] sm:$0xff]  }
  0x31   : > { %2930 = vrot.lane.b32.xlu0 %v2924_v2, %s3631_s8  ;;  %v855_v2 = vrot.slane %v3836_v51, 3  ;;  %v3863_v13 = vpack.i.bf16 %v565_v1, %v563_v0  ;;  %v854_v14 = vsel %vm839_vm2, %v851_v61, %v853_v63  ;;  %v850_v15 = vsel %vm839_vm2, %v847_v37, %v849_v33 }
  0x32   : > { %v852_v16 = vsel %vm839_vm2, %v849_v33, %v851_v61  ;;  %v3878_v21 = vunpack.c.l.bf16 %v2674_v7  ;;  %v1038_v24 = vsel %vm1021_vm3, %v1035_v12, %v1037_v18  ;;  %v1039_v25 = vrot.slane %v3876_v20, 4 }
  0x33   : > { %v856_v17 = vsel %vm839_vm2, %v853_v63, %v855_v2  ;;  %v2989_v37 = vpack.i.bf16 %v852_v16, %v850_v15  ;;  %v1327_v34 = vrot.slane %v3834_v50, 5  ;;  %v382_v35 = vrot.slane %v3834_v50, 1 }
  0x34   : > { %2945 = vrot.lane.b32.xlu1 %v2944_v29, %s3632_s9  ;;  %5750 = vst [vmem:[#allocation2_spill] sm:$0xff] %v3878_v21  ;;  %v2994_v23 = vpack.i.bf16 %v856_v17, %v854_v14  ;;  %v1041_v26 = vrot.slane %v3878_v21, 4  ;;  %v1329_v29 = vrot.slane %v3836_v51, 5  ;;  %v1333_v31 = vrot.slane %v3878_v21, 5 }
  0x35   : > { %2940 = vrot.lane.b32.xlu0 %v2939_v30, %s3632_s9  ;;  %v1331_v30 = vrot.slane %v3876_v20, 5  ;;  %v1040_v32 = vsel %vm1021_vm3, %v1037_v18, %v1039_v25  ;;  %v1511_v46 = vrot.slane %v3836_v51, 6  ;;  %v1328_v47 = vsel %vm1317_vm4, %v1325_v11, %v1327_v34 }
  0x36   : > { %v1330_v48 = vsel %vm1317_vm4, %v1327_v34, %v1329_v29  ;;  %v383_v52 = vsel %vm364_vm1, %v380_v38, %v382_v35  ;;  %v386_v53 = vrot.slane %v3876_v20, 1  ;;  %v1513_v56 = vrot.slane %v3876_v20, 6 }
  0x37   : > { %v1332_v39 = vsel %vm1317_vm4, %v1329_v29, %v1331_v30  ;;  %v1334_v22 = vsel %vm1317_vm4, %v1331_v30, %v1333_v31  ;;  %v1515_v11 = vrot.slane %v3878_v21, 6  ;;  %v3944_v14 = vunpack.c.h.bf16 %v2674_v7 }
  0x38   : > { %2955 = vrot.lane.b32.xlu1 %v2954_v41, %s3627_s24  ;;  %v384_v41 = vrot.slane %v3836_v51, 1  ;;  %v3024_v49 = vpack.i.bf16 %v1334_v22, %v1332_v39  ;;  %v1514_v0 = vsel %vm1499_vm5, %v1511_v46, %v1513_v56  ;;  %v3946_v15 = vunpack.c.l.bf16 %v2675_v58 }
  0x39   : > { %2950 = vrot.lane.b32.xlu0 %v2949_v43, %s3633_s10  ;;  %v1509_v43 = vrot.slane %v3834_v50, 6  ;;  %v1516_v1 = vsel %vm1499_vm5, %v1513_v56, %v1515_v11  ;;  %5751 = vst [vmem:[#allocation3_spill] sm:$0xff] %v3944_v14  ;;  %v861_v29 = vrot.slane %v3944_v14, 3  ;;  %v1043_v22 = vrot.slane %v3944_v14, 4 }
  0x3a   : > { %v387_v61 = vsel %vm364_vm1, %v384_v41, %v386_v53  ;;  %v3039_v17 = vpack.i.bf16 %v1516_v1, %v1514_v0  ;;  %v572_v7 = vrot.slane %v3946_v15, 2  ;;  %v863_v30 = vrot.slane %v3946_v15, 3 }
  0x3b   : > { %v1510_v38 = vsel %vm1499_vm5, %v1507_v40, %v1509_v43  ;;  %v1512_v57 = vsel %vm1499_vm5, %v1509_v43, %v1511_v46  ;;  %v566_v40 = vrot.slane %v3876_v20, 2  ;;  %v1045_v46 = vrot.slane %v3946_v15, 4 }
  0x3c   : > { %2965 = vrot.lane.b32.xlu1 %v2964_v55, %s3627_s24  ;;  %v388_v55 = vrot.slane %v3878_v21, 1  ;;  %v3029_v63 = vpack.i.bf16 %v1512_v57, %v1510_v38  ;;  %v864_v43 = vsel %vm839_vm2, %v861_v29, %v863_v30 }
  0x3d   : > { %2960 = vrot.lane.b32.xlu0 %v2959_v45, %s3633_s10  ;;  %v3019_v45 = vpack.i.bf16 %v1330_v48, %v1328_v47  ;;  %v567_v18 = vsel %vm544_vm0, %v564_v59, %v566_v40 }
  0x3e   : > { %v389_v33 = vsel %vm364_vm1, %v386_v53, %v388_v55 }
  0x3f   : > { %v3044_v16 = vpack.i.bf16 %v389_v33, %v387_v61  ;;  %v392_v33 = vrot.slane %v3946_v15, 1 }
  0x40   : > { %2975 = vrot.lane.b32.xlu1 %v2974_v60, %s3626_s23 }
  0x41   : > { %2970 = vrot.lane.b32.xlu0 %v3740_v42, %s3626_s23  ;;  %v1036_v42 = vsel %vm1021_vm3, %v1033_v62, %v1035_v12  ;;  %v1042_v62 = vsel %vm1021_vm3, %v1039_v25, %v1041_v26  ;;  %v568_v12 = vrot.slane %v3878_v21, 2  ;;  %v857_v25 = vrot.slane %v3876_v20, 3 }
  0x42   : > { %v3004_v27 = vpack.i.bf16 %v1038_v24, %v1036_v42  ;;  %v3901_v36 = vpack.i.bf16 %v1042_v62, %v1040_v32  ;;  %v859_v24 = vrot.slane %v3878_v21, 3  ;;  %v3967_v32 = vld [vmem:[%s3687_s22 + $0x40] sm:$0xff]   ;;  %v3969_v62 = vunpack.c.h.bf16 %v2675_v58 }
  0x43   : > { %v3987_v47 = vunpack.c.l.bf16 %v3967_v32  ;;  %v2078_v58 = vsel %vm1499_vm5, %v3807_v28, 0  ;;  %v1519_v28 = vrot.slane %v3946_v15, 6 }
  0x44   : > { %2985 = vrot.lane.b32.xlu1 %v3863_v13, %s3628_s25  ;;  %v860_v39 = vsel %vm839_vm2, %v857_v25, %v859_v24  ;;  %v1339_v56 = vrot.slane %v3969_v62, 5  ;;  %2754 = vmatpush3.bf16.msra.mxu0 %v2078_v58 }
  0x45   : > { %2980 = vrot.lane.b32.xlu0 %v2974_v60, %s3628_s25  ;;  %5752 = vst [vmem:[#allocation4_spill] sm:$0xff] %v3987_v47  ;;  %v1049_v53 = vrot.slane %v3987_v47, 4  ;;  %v1341_v38 = vrot.slane %v3987_v47, 5 }
  0x47   : > { %v1342_v1 = vsel %vm1317_vm4, %v1339_v56, %v1341_v38 }
  0x48   : > { %2995 = vrot.lane.b32.xlu1 %v2994_v23, %s3629_s28  ;;  %v569_v23 = vsel %vm544_vm0, %v566_v40, %v568_v12  ;;  %v1517_v40 = vrot.slane %v3944_v14, 6 }
  0x49   : > { %2990 = vrot.lane.b32.xlu0 %v2989_v37, %s3629_s28  ;;  %v570_v37 = vrot.slane %v3944_v14, 2  ;;  %v3054_v42 = vpack.i.bf16 %v569_v23, %v567_v18 }
  0x4b   : > { %v573_v59 = vsel %vm544_vm0, %v570_v37, %v572_v7 }
  0x4c   : > { %3005 = vrot.lane.b32.xlu1 %v3004_v27, %s3630_s5 }
  0x4d   : > { %3000 = vrot.lane.b32.xlu0 %v3792_v19, %s3630_s5  ;;  %v385_v19 = vsel %vm364_vm1, %v382_v35, %v384_v41  ;;  %v858_v35 = vsel %vm839_vm2, %v855_v2, %v857_v25  ;;  %v862_v41 = vsel %vm839_vm2, %v859_v24, %v861_v29  ;;  %v1523_v25 = vrot.slane %v3987_v47, 6 }
  0x4e   : > { %v3034_v60 = vpack.i.bf16 %v385_v19, %v383_v52  ;;  %v3074_v2 = vpack.i.bf16 %v864_v43, %v862_v41  ;;  %v3069_v48 = vpack.i.bf16 %v860_v39, %v858_v35  ;;  %v1047_v52 = vrot.slane %v3969_v62, 4 }
  0x4f   : > { %v1337_v19 = vrot.slane %v3946_v15, 5  ;;  %v574_v39 = vrot.slane %v3969_v62, 2 }
  0x50   : > { %3015 = vrot.lane.b32.xlu1 %v3901_v36, %s3631_s8  ;;  %v1048_v57 = vsel %vm1021_vm3, %v1045_v46, %v1047_v52 }
  0x51   : > { %3010 = vrot.lane.b32.xlu0 %v3004_v27, %s3631_s8  ;;  %v571_v27 = vsel %vm544_vm0, %v568_v12, %v570_v37  ;;  %v1340_v61 = vsel %vm1317_vm4, %v1337_v19, %v1339_v56  ;;  %v1520_v37 = vsel %vm1499_vm5, %v1517_v40, %v1519_v28 }
  0x52   : > { %v3972_v34 = vpack.i.bf16 %v573_v59, %v571_v27  ;;  %v2677_v27 = vld [vmem:[%s3687_s22 + $0x48] sm:$0xff]  }
  0x54   : > { %3025 = vrot.lane.b32.xlu1 %v3024_v49, %s3632_s9  ;;  %v1046_v49 = vsel %vm1021_vm3, %v1043_v22, %v1045_v46  ;;  %v4056_v46 = vunpack.c.h.bf16 %v3967_v32  ;;  %v2678_v32 = vld [vmem:[%s3687_s22 + $0x50] sm:$0xff]  }
  0x55   : > { %3020 = vrot.lane.b32.xlu0 %v3019_v45, %s3632_s9 }
  0x56   : > { %5753 = vst [vmem:[#allocation5_spill] sm:$0xff] %v4056_v46 }
  0x58   : > { %3035 = vrot.lane.b32.xlu1 %v3034_v60, %s3627_s24  ;;  %v1335_v60 = vrot.slane %v3944_v14, 5 }
  0x59   : > { %3030 = vrot.lane.b32.xlu0 %v3029_v63, %s3633_s10  ;;  %v390_v63 = vrot.slane %v3944_v14, 1 }
  0x5a   : > { %v1336_v12 = vsel %vm1317_vm4, %v1333_v31, %v1335_v60  ;;  %v394_v31 = vrot.slane %v3969_v62, 1 }
  0x5b   : > { %v391_v18 = vsel %vm364_vm1, %v388_v55, %v390_v63  ;;  %v393_v23 = vsel %vm364_vm1, %v390_v63, %v392_v33  ;;  %v1521_v55 = vrot.slane %v3969_v62, 6  ;;  %v4079_v63 = vunpack.c.h.bf16 %v2677_v27 }
  0x5c   : > { %3045 = vrot.lane.b32.xlu1 %v3044_v16, %s3627_s24  ;;  %v1338_v16 = vsel %vm1317_vm4, %v1335_v60, %v1337_v19  ;;  %v3114_v59 = vpack.i.bf16 %v393_v23, %v391_v18  ;;  %v578_v19 = vrot.slane %v4056_v46, 2 }
  0x5d   : > { %3040 = vrot.lane.b32.xlu0 %v3039_v17, %s3633_s10  ;;  %v3104_v17 = vpack.i.bf16 %v1342_v1, %v1340_v61  ;;  %v3099_v24 = vpack.i.bf16 %v1338_v16, %v1336_v12  ;;  %v1522_v41 = vsel %vm1499_vm5, %v1519_v28, %v1521_v55  ;;  %v1524_v43 = vsel %vm1499_vm5, %v1521_v55, %v1523_v25 }
  0x5e   : > { %v865_v61 = vrot.slane %v3969_v62, 3  ;;  %5755 = vst [vmem:[#allocation7_spill] sm:$0xff] %v4079_v63  ;;  %v1055_v23 = vrot.slane %v4079_v63, 4 }
  0x60   : > { %3055 = vrot.lane.b32.xlu1 %v3054_v42, %s3626_s23  ;;  %v866_v16 = vsel %vm839_vm2, %v863_v30, %v865_v61 }
  0x61   : > { %3050 = vrot.lane.b32.xlu0 %v3863_v13, %s3626_s23  ;;  %v1044_v13 = vsel %vm1021_vm3, %v1041_v26, %v1043_v22  ;;  %v1050_v26 = vsel %vm1021_vm3, %v1047_v52, %v1049_v53  ;;  %v576_v22 = vrot.slane %v3987_v47, 2 }
  0x62   : > { %v3084_v45 = vpack.i.bf16 %v1046_v49, %v1044_v13  ;;  %v4014_v0 = vpack.i.bf16 %v1050_v26, %v1048_v57  ;;  %v3119_v13 = vpack.i.bf16 %v1524_v43, %v1522_v41  ;;  %v575_v49 = vsel %vm544_vm0, %v572_v7, %v574_v39 }
  0x63   : > { %v577_v52 = vsel %vm544_vm0, %v574_v39, %v576_v22  ;;  %v867_v57 = vrot.slane %v3987_v47, 3  ;;  %v869_v26 = vrot.slane %v4056_v46, 3  ;;  %v579_v58 = vsel %vm544_vm0, %v576_v22, %v578_v19  ;;  %v2679_v22 = vld [vmem:[%s3687_s22 + $0x58] sm:$0xff]  }
  0x64   : > { %3065 = vrot.lane.b32.xlu1 %v3972_v34, %s3628_s25  ;;  %v398_v39 = vrot.slane %v4056_v46, 1 }
  0x65   : > { %3060 = vrot.lane.b32.xlu0 %v3054_v42, %s3628_s25  ;;  %v396_v42 = vrot.slane %v3987_v47, 1  ;;  %v870_v28 = vsel %vm839_vm2, %v867_v57, %v869_v26  ;;  %v868_v18 = vsel %vm839_vm2, %v865_v61, %v867_v57  ;;  %v402_v61 = vrot.slane %v4079_v63, 1 }
  0x66   : > { %v3149_v55 = vpack.i.bf16 %v868_v18, %v866_v16 }
  0x67   : > { %v397_v35 = vsel %vm364_vm1, %v394_v31, %v396_v42 }
  0x68   : > { %3075 = vrot.lane.b32.xlu1 %v3074_v2, %s3629_s28  ;;  %v4058_v2 = vunpack.c.l.bf16 %v2677_v27 }
  0x69   : > { %3070 = vrot.lane.b32.xlu0 %v3069_v48, %s3629_s28 }
  0x6a   : > { %5754 = vst [vmem:[#allocation6_spill] sm:$0xff] %v4058_v2  ;;  %v580_v56 = vrot.slane %v4058_v2, 2  ;;  %v871_v60 = vrot.slane %v4058_v2, 3 }
  0x6c   : > { %3085 = vrot.lane.b32.xlu1 %v3084_v45, %s3630_s5  ;;  %v581_v7 = vsel %vm544_vm0, %v578_v19, %v580_v56  ;;  %v872_v12 = vsel %vm839_vm2, %v869_v26, %v871_v60  ;;  %v4135_v19 = vunpack.c.l.bf16 %v2679_v22  ;;  %v4141_v26 = vsel %vm364_vm1, %v396_v42, %v398_v39 }
  0x6d   : > { %3080 = vrot.lane.b32.xlu0 %v3901_v36, %s3630_s5  ;;  %v1518_v36 = vsel %vm1499_vm5, %v1515_v11, %v1517_v40  ;;  %v395_v11 = vsel %vm364_vm1, %v392_v33, %v394_v31  ;;  %v4081_v33 = vunpack.c.l.bf16 %v2678_v32  ;;  %v4084_v1 = vpack.i.bf16 %v581_v7, %v579_v58 }
  0x6e   : > { %v3109_v29 = vpack.i.bf16 %v1520_v37, %v1518_v36  ;;  %v3124_v48 = vpack.i.bf16 %v397_v35, %v395_v11  ;;  %v1051_v40 = vrot.slane %v4056_v46, 4  ;;  %v1345_v37 = vrot.slane %v4058_v2, 5 }
  0x6f   : > { %5756 = vst [vmem:[#allocation8_spill] sm:$0xff] %v4081_v33  ;;  %v1057_v36 = vrot.slane %v4081_v33, 4  ;;  %v1347_v31 = vrot.slane %v4079_v63, 5  ;;  %v3154_v30 = vpack.i.bf16 %v872_v12, %v870_v28  ;;  %v1527_v58 = vrot.slane %v4058_v2, 6 }
  0x70   : > { %3095 = vrot.lane.b32.xlu1 %v4014_v0, %s3631_s8  ;;  %v1052_v27 = vsel %vm1021_vm3, %v1049_v53, %v1051_v40  ;;  %v5722_v12 = vrot.slane %v4081_v33, 6  ;;  %v582_v42 = vrot.slane %v4079_v63, 2  ;;  %v584_v16 = vrot.slane %v4081_v33, 2 }
  0x71   : > { %3090 = vrot.lane.b32.xlu0 %v3084_v45, %s3631_s8  ;;  %v3134_v45 = vpack.i.bf16 %v577_v52, %v575_v49  ;;  %v1058_v11 = vsel %vm1021_vm3, %v1055_v23, %v1057_v36  ;;  %v1348_v41 = vsel %vm1317_vm4, %v1345_v37, %v1347_v31  ;;  %v1525_v49 = vrot.slane %v4056_v46, 6 }
  0x72   : > { %v4133_v52 = vunpack.c.h.bf16 %v2678_v32  ;;  %v1529_v32 = vrot.slane %v4079_v63, 6  ;;  %v5721_v18 = vrot.slane %v4135_v19, 2 }
  0x73   : > { %v1526_v28 = vsel %vm1499_vm5, %v1523_v25, %v1525_v49 }
  0x74   : > { %3105 = vrot.lane.b32.xlu1 %v3104_v17, %s3632_s9  ;;  %v1053_v17 = vrot.slane %v4058_v2, 4  ;;  %5757 = vst [vmem:[#allocation9_spill] sm:$0xff] %v4133_v52 }
  0x75   : > { %3100 = vrot.lane.b32.xlu0 %v3099_v24, %s3632_s9  ;;  %v5724_v24 = vrot.slane %v4081_v33, 5 }
  0x77   : > { %v1350_v53 = vsel %vm1317_vm4, %v1347_v31, %v5724_v24  ;;  %v1528_v31 = vsel %vm1499_vm5, %v1525_v49, %v1527_v58 }
  0x78   : > { %3115 = vrot.lane.b32.xlu1 %v3114_v59, %s3627_s24  ;;  %v1054_v59 = vsel %vm1021_vm3, %v1051_v40, %v1053_v17  ;;  %v5723_v40 = vrot.slane %v4081_v33, 1 }
  0x79   : > { %3110 = vrot.lane.b32.xlu0 %v3109_v29, %s3633_s10  ;;  %v1056_v29 = vsel %vm1021_vm3, %v1053_v17, %v1055_v23  ;;  %v586_v17 = vrot.slane %v4133_v52, 2  ;;  %v875_v23 = vrot.slane %v4081_v33, 3 }
  0x7b   : > { %v589_v49 = vsel %vm544_vm0, %v586_v17, %v5721_v18 }
  0x7c   : > { %3125 = vrot.lane.b32.xlu1 %v3124_v48, %s3627_s24  ;;  %v400_v48 = vrot.slane %v4058_v2, 1 }
  0x7d   : > { %3120 = vrot.lane.b32.xlu0 %v3119_v13, %s3633_s10  ;;  %v3164_v13 = vpack.i.bf16 %v1054_v59, %v1052_v27  ;;  %v4175_v59 = vsel %vm364_vm1, %v402_v61, %v5723_v40 }
  0x7e   : > { %v401_v7 = vsel %vm364_vm1, %v398_v39, %v400_v48  ;;  %v4185_v39 = vsel %vm1499_vm5, %v1527_v58, %v1529_v32 }
  0x7f   : > { %v3194_v25 = vpack.i.bf16 %v401_v7, %v4141_v26 }
  0x80   : > { %3135 = vrot.lane.b32.xlu1 %v3134_v45, %s3626_s23 }
  0x81   : > { %3130 = vrot.lane.b32.xlu0 %v3972_v34, %s3626_s23  ;;  %v1343_v34 = vrot.slane %v4056_v46, 5 }
  0x83   : > { %v4118_v35 = vsel %vm1317_vm4, %v1341_v38, %v1343_v34  ;;  %v1346_v43 = vsel %vm1317_vm4, %v1343_v34, %v1345_v37  ;;  %v4131_v38 = vpack.i.bf16 %v1058_v11, %v1056_v29  ;;  %v873_v34 = vrot.slane %v4079_v63, 3 }
  0x84   : > { %3145 = vrot.lane.b32.xlu1 %v4084_v1, %s3628_s25  ;;  %v3179_v57 = vpack.i.bf16 %v1346_v43, %v4118_v35  ;;  %v1059_v29 = vrot.slane %v4133_v52, 4  ;;  %v1061_v11 = vrot.slane %v4135_v19, 4  ;;  %v4180_v35 = vld [vmem:[%s3687_s22 + $0x60] sm:$0xff]   ;;  %v585_v43 = vsel %vm544_vm0, %v582_v42, %v584_v16 }
  0x85   : > { %3140 = vrot.lane.b32.xlu0 %v3134_v45, %s3628_s25  ;;  %v3184_v45 = vpack.i.bf16 %v1350_v53, %v1348_v41  ;;  %v4190_v41 = vsel %vm1499_vm5, %v1529_v32, %v5722_v12  ;;  %v583_v53 = vsel %vm544_vm0, %v580_v56, %v582_v42  ;;  %v4204_v26 = vsel %vm839_vm2, %v871_v60, %v873_v34 }
  0x86   : > { %v4207_v58 = vsel %vm839_vm2, %v873_v34, %v875_v23  ;;  %v4222_v32 = vunpack.c.l.bf16 %v4180_v35  ;;  %v3189_v42 = vpack.i.bf16 %v1528_v31, %v1526_v28  ;;  %v4235_v34 = vpack.i.bf16 %v585_v43, %v583_v53 }
  0x87   : > { %v1351_v53 = vrot.slane %v4133_v52, 5  ;;  %v406_v43 = vrot.slane %v4133_v52, 1 }
  0x88   : > { %3155 = vrot.lane.b32.xlu1 %v3154_v30, %s3629_s28  ;;  %v877_v30 = vrot.slane %v4133_v52, 3 }
  0x89   : > { %3150 = vrot.lane.b32.xlu0 %v3149_v55, %s3629_s28  ;;  %v5720_v55 = vrot.slane %v4135_v19, 3 }
  0x8a   : > { %v4212_v56 = vsel %vm839_vm2, %v875_v23, %v877_v30  ;;  %v1062_v23 = vsel %vm1021_vm3, %v1059_v29, %v1061_v11 }
  0x8c   : > { %3165 = vrot.lane.b32.xlu1 %v3164_v13, %s3630_s5 }
  0x8d   : > { %3160 = vrot.lane.b32.xlu0 %v4014_v0, %s3630_s5  ;;  %v4170_v0 = vsel %vm364_vm1, %v400_v48, %v402_v61  ;;  %v587_v48 = vsel %vm544_vm0, %v584_v16, %v586_v17  ;;  %v4219_v61 = vunpack.c.h.bf16 %v2679_v22  ;;  %v1060_v17 = vsel %vm1021_vm3, %v1057_v36, %v1059_v29 }
  0x8e   : > { %v4161_v37 = vpop.permute.xlu1 %2890  ;;  %v3204_v16 = vpack.i.bf16 %v4175_v59, %v4170_v0  ;;  %v3199_v22 = vpack.i.bf16 %v4190_v41, %v4185_v39  ;;  %v4246_v0 = vpack.i.bf16 %v1062_v23, %v1060_v17  ;;  %v5726_v59 = vrot.slane %v4222_v32, 4 }
  0x8f   : > { %v4167_v27 = vpop.permute.xlu0 %2880  ;;  %v1355_v39 = vrot.slane %v4219_v61, 5  ;;  %v5728_v41 = vrot.slane %v4222_v32, 5  ;;  %v1535_v17 = vrot.slane %v4135_v19, 6  ;;  %v410_v23 = vrot.slane %v4219_v61, 1 }
  0x90   : > { %3175 = vrot.lane.b32.xlu1 %v4131_v38, %s3631_s8  ;;  %v1537_v31 = vrot.slane %v4219_v61, 6  ;;  %v590_v40 = vrot.slane %v4219_v61, 2 }
  0x91   : > { %3170 = vrot.lane.b32.xlu0 %v3164_v13, %s3631_s8  ;;  %v4217_v13 = vsel %vm839_vm2, %v877_v30, %v5720_v55  ;;  %v4238_v30 = vpack.i.bf16 %v589_v49, %v587_v48  ;;  %v408_v48 = vrot.slane %v4135_v19, 1  ;;  %v1533_v49 = vrot.slane %v4133_v52, 6 }
  0x92   : > { %v4209_v7 = vpop.permute.xlu1 %2895  ;;  %v4282_v28 = vsel %vm1317_vm4, %v1355_v39, %v5728_v41 }
  0x93   : > { %v4224_v60 = vpop.permute.xlu0 %2885  ;;  %v4299_v47 = vsel %vm364_vm1, %v406_v43, %v408_v48  ;;  %v2897_v63 = vunpack.i.l.bf16 %v4209_v7 }
  0x94   : > { %3185 = vrot.lane.b32.xlu1 %v3184_v45, %s3632_s9  ;;  %v1063_v45 = vrot.slane %v4219_v61, 4  ;;  %v2887_v2 = vunpack.i.l.bf16 %v4224_v60 }
  0x95   : > { %3180 = vrot.lane.b32.xlu0 %v3179_v57, %s3632_s9  ;;  %v1353_v57 = vrot.slane %v4135_v19, 5 }
  0x96   : > { %v4244_v36 = vpop.permute.xlu1 %2905  ;;  %v1064_v18 = vsel %vm1021_vm3, %v1061_v11, %v1063_v45  ;;  %v1066_v12 = vsel %vm1021_vm3, %v1063_v45, %v5726_v59  ;;  %v5758_v11 = vrot.slane %v4081_v33, 5  ;;  %v5759_v59 = vrot.slane %v4081_v33, 1 }
  0x97   : > { %v4250_v29 = vpop.permute.xlu0 %2900  ;;  %v4277_v55 = vsel %vm1317_vm4, %v1353_v57, %v1355_v39  ;;  %v4290_v45 = vsel %vm1317_vm4, %v1351_v53, %v1353_v57  ;;  %v5760_v39 = vrot.slane %v4081_v33, 6  ;;  %v5761_v57 = vrot.slane %v4222_v32, 1 }
  0x98   : > { %3195 = vrot.lane.b32.xlu1 %v3194_v25, %s3627_s24  ;;  %v4287_v52 = vsel %vm1317_vm4, %v5758_v11, %v1351_v53  ;;  %v4307_v11 = vsel %vm1499_vm5, %v1533_v49, %v1535_v17  ;;  %v4319_v53 = vsel %vm1499_vm5, %v1535_v17, %v1537_v31 }
  0x99   : > { %3190 = vrot.lane.b32.xlu0 %v3189_v42, %s3633_s10  ;;  %v4296_v42 = vsel %vm364_vm1, %v5759_v59, %v406_v43  ;;  %v4304_v41 = vsel %vm1499_vm5, %v5760_v39, %v1533_v49  ;;  %v4316_v59 = vsel %vm364_vm1, %v410_v23, %v5761_v57  ;;  %v5762_v43 = vrot.slane %v4222_v32, 6 }
  0x9a   : > { %v4266_v25 = vpop.permute.xlu1 %2915  ;;  %v2883_v49 = vunpack.i.h.bf16 %v4167_v27  ;;  %v2888_v57 = vunpack.i.h.bf16 %v4224_v60 }
  0x9b   : > { %v4274_v24 = vpop.permute.xlu0 %2910  ;;  %v4324_v39 = vsel %vm1499_vm5, %v1537_v31, %v5762_v43  ;;  %v4340_v43 = vpack.i.bf16 %v1066_v12, %v1064_v18  ;;  %v2893_v18 = vunpack.i.h.bf16 %v4161_v37  ;;  %v2898_v12 = vunpack.i.h.bf16 %v4209_v7 }
  0x9c   : > { %3205 = vrot.lane.b32.xlu1 %v3204_v16, %s3627_s24  ;;  %v4311_v16 = vsel %vm364_vm1, %v408_v48, %v410_v23  ;;  %v5763_v48 = vrot.slane %v4135_v19, 2  ;;  %v5764_v23 = vrot.slane %v4222_v32, 2  ;;  %v2902_v7 = vunpack.i.l.bf16 %v4250_v29 }
  0x9d   : > { %3200 = vrot.lane.b32.xlu0 %v3199_v22, %s3633_s10  ;;  %v2882_v22 = vunpack.i.l.bf16 %v4167_v27  ;;  %v2913_v21 = vunpack.i.h.bf16 %v4274_v24 }
  0x9e   : > { %v4328_v33 = vpop.permute.xlu1 %2925  ;;  %v591_v46 = vsel %vm544_vm0, %v5763_v48, %v590_v40  ;;  %v593_v17 = vsel %vm544_vm0, %v590_v40, %v5764_v23  ;;  %v2892_v23 = vunpack.i.l.bf16 %v4161_v37  ;;  %v1683_v40 = vsel %vm1681_vm6, %v3694_v4, %v2883_v49 }
  0x9f   : > { %v4338_v31 = vpop.permute.xlu0 %2920  ;;  %v4360_v27 = vpack.i.bf16 %v593_v17, %v591_v46  ;;  %v1682_v60 = vsel %vm1681_vm6, %v3692_v3, %v2882_v22  ;;  %v1685_v48 = vsel %vm1681_vm6, %v3698_v6, %v2888_v57  ;;  %v1684_v46 = vsel %vm1681_vm6, %v3696_v5, %v2887_v2 }
  0xa0   : > { %3215 = vrot.lane.b32.xlu1 %v4235_v34, %s3626_s23  ;;  %v2908_v4 = vunpack.i.h.bf16 %v4244_v36  ;;  %v2907_v49 = vunpack.i.l.bf16 %v4244_v36  ;;  %v2903_v22 = vunpack.i.h.bf16 %v4250_v29  ;;  %v4384_v17 = vunpack.c.h.bf16 %v4180_v35 }
  0xa1   : > { %3210 = vrot.lane.b32.xlu0 %v4084_v1, %s3626_s23  ;;  %v4371_v1 = vld [vmem:[%s3687_s22 + $0x68] sm:$0xff]   ;;  %v1719_v6 = vsel %vm1718_vm7, %v1682_v60, %v2892_v23  ;;  %v1720_v5 = vsel %vm1718_vm7, %v1683_v40, %v2893_v18  ;;  %v1721_v29 = vsel %vm1718_vm7, %v1684_v46, %v2897_v63  ;;  %v1722_v57 = vsel %vm1718_vm7, %v1685_v48, %v2898_v12 }
  0xa2   : > { %v4368_v37 = vpop.permute.xlu1 %2935  ;;  %v4391_v2 = vunpack.c.l.bf16 %v4371_v1  ;;  %v2912_v35 = vunpack.i.l.bf16 %v4274_v24  ;;  %v1758_v40 = vsel %vm1755_vm8, %v1721_v29, %v2907_v49  ;;  %v1759_v60 = vsel %vm1755_vm8, %v1722_v57, %v2908_v4 }
  0xa3   : > { %v2931_v3 = vpop.permute.xlu0 %2930  ;;  %v2922_v18 = vunpack.i.l.bf16 %v4338_v31  ;;  %v1756_v36 = vsel %vm1755_vm8, %v1719_v6, %v2902_v7  ;;  %v1757_v63 = vsel %vm1755_vm8, %v1720_v5, %v2903_v22  ;;  %v5765_v24 = vpack.i.bf16 %v4217_v13, %v4212_v56 }
  0xa4   : > { %3225 = vrot.lane.b32.xlu1 %v4238_v30, %s3628_s25  ;;  %v2933_v48 = vunpack.i.h.bf16 %v2931_v3  ;;  %v2932_v12 = vunpack.i.l.bf16 %v2931_v3  ;;  %v2918_v46 = vunpack.i.h.bf16 %v4266_v25  ;;  %v2917_v4 = vunpack.i.l.bf16 %v4266_v25 }
  0xa5   : > { %3220 = vrot.lane.b32.xlu0 %v4235_v34, %s3628_s25  ;;  %v2923_v34 = vunpack.i.h.bf16 %v4338_v31  ;;  %v5766_v31 = vpack.i.bf16 %v4207_v58, %v4204_v26  ;;  %v1793_v22 = vsel %vm1792_vm9, %v1756_v36, %v2912_v35  ;;  %v1794_v3 = vsel %vm1792_vm9, %v1757_v63, %v2913_v21 }
  0xa6   : > { %v2946_v14 = vpop.permute.xlu1 %2945  ;;  %v2928_v7 = vunpack.i.h.bf16 %v4328_v33  ;;  %v2927_v56 = vunpack.i.l.bf16 %v4328_v33  ;;  %v1830_v6 = vsel %vm1829_vm10, %v1793_v22, %v2922_v18  ;;  %v2938_v5 = vunpack.i.h.bf16 %v4368_v37 }
  0xa7   : > { %v2941_v23 = vpop.permute.xlu0 %2940  ;;  %v1831_v25 = vsel %vm1829_vm10, %v1794_v3, %v2923_v34  ;;  %v2937_v57 = vunpack.i.l.bf16 %v4368_v37  ;;  %v1867_v21 = vsel %vm1866_vm11, %v1830_v6, %v2932_v12  ;;  %v2948_v35 = vunpack.i.h.bf16 %v2946_v14 }
  0xa8   : > { %3235 = vrot.lane.b32.xlu1 %v5765_v24, %s3629_s28  ;;  %v2943_v49 = vunpack.i.h.bf16 %v2941_v23  ;;  %v2942_v29 = vunpack.i.l.bf16 %v2941_v23  ;;  %v1868_v33 = vsel %vm1866_vm11, %v1831_v25, %v2933_v48  ;;  %v2947_v23 = vunpack.i.l.bf16 %v2946_v14  ;;  %v4439_v48 = vld [vmem:[%s3687_s22 + $0x70] sm:$0xff]  }
  0xa9   : > { %3230 = vrot.lane.b32.xlu0 %v5766_v31, %s3629_s28  ;;  %v1795_v18 = vsel %vm1792_vm9, %v1758_v40, %v2917_v4  ;;  %v1796_v63 = vsel %vm1792_vm9, %v1759_v60, %v2918_v46 }
  0xaa   : > { %v4418_v13 = vpop.permute.xlu1 %2955  ;;  %v1904_v34 = vsel %vm1903_vm12, %v1867_v21, %v2942_v29  ;;  %v1905_v37 = vsel %vm1903_vm12, %v1868_v33, %v2943_v49  ;;  %v1832_v14 = vsel %vm1829_vm10, %v1795_v18, %v2927_v56  ;;  %v881_v49 = vrot.slane %v4219_v61, 3 }
  0xab   : > { %v2951_v26 = vpop.permute.xlu0 %2950  ;;  %v1869_v40 = vsel %vm1866_vm11, %v1832_v14, %v2937_v57  ;;  %v4457_v56 = vunpack.c.l.bf16 %v4439_v48  ;;  %v885_v21 = vrot.slane %v4384_v17, 3  ;;  %v5767_v33 = vpack.i.bf16 %v4282_v28, %v4277_v55 }
  0xac   : > { %v2953_v58 = vunpack.i.h.bf16 %v2951_v26  ;;  %v2952_v36 = vunpack.i.l.bf16 %v2951_v26  ;;  %3245 = vrot.lane.b32.xlu1 %v4246_v0, %s3630_s5  ;;  %v1906_v3 = vsel %vm1903_vm12, %v1869_v40, %v2947_v23  ;;  %v594_v26 = vrot.slane %v4384_v17, 2 }
  0xad   : > { %3240 = vrot.lane.b32.xlu0 %v4131_v38, %s3630_s5  ;;  %v1833_v38 = vsel %vm1829_vm10, %v1796_v63, %v2928_v7  ;;  %v4454_v7 = vunpack.c.h.bf16 %v4371_v1  ;;  %v1067_v1 = vrot.slane %v4384_v17, 4  ;;  %v5768_v23 = vrot.slane %v4135_v19, 3 }
  0xae   : > { %v4434_v24 = vpop.permute.xlu1 %2965  ;;  %v1941_v31 = vsel %vm1940_vm13, %v1904_v34, %v2952_v36  ;;  %v1942_v12 = vsel %vm1940_vm13, %v1905_v37, %v2953_v58  ;;  %v1870_v60 = vsel %vm1866_vm11, %v1833_v38, %v2938_v5  ;;  %v5769_v37 = vrot.slane %v4222_v32, 3 }
  0xaf   : > { %v2961_v22 = vpop.permute.xlu0 %2960  ;;  %v1977_v29 = vpack.c.bf16 %v1942_v12, %v1941_v31  ;;  %v1907_v6 = vsel %vm1903_vm12, %v1870_v60, %v2948_v35  ;;  %v5737_v35 = vrot.slane %v4391_v2, 3  ;;  %v4477_v34 = vsel %vm839_vm2, %v5768_v23, %v881_v49 }
  0xb0   : > { %v2963_v46 = vunpack.i.h.bf16 %v2961_v22  ;;  %v2962_v4 = vunpack.i.l.bf16 %v2961_v22  ;;  %3255 = vrot.lane.b32.xlu1 %v4340_v43, %s3631_s8  ;;  %v4482_v18 = vsel %vm839_vm2, %v881_v49, %v5769_v37  ;;  %v1069_v63 = vrot.slane %v4391_v2, 4 }
  0xb1   : > { %3250 = vrot.lane.b32.xlu0 %v4246_v0, %s3631_s8  ;;  %2755 = vmatprep.mubr.msk.bf16.mxu0 %vm2022_vm14, %v1977_v29  ;;  %v5738_v0 = vrot.slane %v4391_v2, 2  ;;  %v5770_v31 = vpack.i.bf16 %v4290_v45, %v4287_v52  ;;  %v1071_v55 = vrot.slane %v4454_v7, 4  ;;  %v5736_v28 = vrot.slane %v4457_v56, 4 }
  0xb2   : > { %v1943_v25 = vsel %vm1940_vm13, %v1906_v3, %v2962_v4  ;;  %v1944_v5 = vsel %vm1940_vm13, %v1907_v6, %v2963_v46  ;;  %v4461_v57 = vpop.permute.xlu1 %2975  ;;  %v1361_v12 = vrot.slane %v4391_v2, 5  ;;  %v1363_v14 = vrot.slane %v4454_v7, 5 }
  0xb3   : > { %v4464_v58 = vpop.permute.xlu0 %2970  ;;  %v1978_v36 = vpack.c.bf16 %v1944_v5, %v1943_v25  ;;  %v5771_v22 = vrot.slane %v4222_v32, 2  ;;  %v5735_v49 = vrot.slane %v4457_v56, 5  ;;  %v1359_v52 = vrot.slane %v4384_v17, 5 }
  0xb4   : > { %3265 = vrot.lane.b32.xlu1 %v5767_v33, %s3632_s9  ;;  %v597_v40 = vsel %vm544_vm0, %v594_v26, %v5738_v0  ;;  %v5772_v60 = vmov %v5769_v37  ;;  %v414_v4 = vrot.slane %v4384_v17, 1  ;;  %v416_v3 = vrot.slane %v4391_v2, 1 }
  0xb5   : > { %3260 = vrot.lane.b32.xlu0 %v5770_v31, %s3632_s9  ;;  %2756 = vmatmul.mubr.msk.bf16.vlgmr.msra.gmra.mrb[0].mxu0 %vm2022_vm14, %v1978_v36  ;;  %v595_v29 = vsel %vm544_vm0, %v5771_v22, %v594_v26  ;;  %v4509_v46 = vsel %vm839_vm2, %v5772_v60, %v885_v21  ;;  %v5773_v6 = vpack.i.bf16 %v4299_v47, %v4296_v42  ;;  %v5774_v36 = vrot.slane %v4222_v32, 4 }
  0xb6   : > { %v4494_v38 = vpop.permute.xlu1 %2985  ;;  %v4517_v25 = vpack.i.bf16 %v597_v40, %v595_v29  ;;  %v4522_v5 = vsel %vm839_vm2, %v885_v21, %v5737_v35  ;;  %v3309_v26 = vpack.i.bf16 %v4482_v18, %v4477_v34  ;;  %v5775_v23 = vpack.i.bf16 %v4307_v11, %v4304_v41 }
  0xb7   : > { %v4501_v45 = vpop.permute.xlu0 %2980  ;;  %v1068_v33 = vsel %vm1021_vm3, %v5774_v36, %v1067_v1  ;;  %v1070_v47 = vsel %vm1021_vm3, %v1067_v1, %v1069_v63  ;;  %v1072_v42 = vsel %vm1021_vm3, %v1069_v63, %v1071_v55  ;;  %v1074_v21 = vsel %vm1021_vm3, %v1071_v55, %v5736_v28 }
  0xb8   : > { %3275 = vrot.lane.b32.xlu1 %v5773_v6, %s3627_s24  ;;  %v4539_v37 = vsel %vm1317_vm4, %v1361_v12, %v1363_v14  ;;  %v4546_v22 = vsel %vm1317_vm4, %v1363_v14, %v5735_v49  ;;  %v5776_v41 = vrot.slane %v4222_v32, 5  ;;  %v4554_v1 = vsel %vm1317_vm4, %v1359_v52, %v1361_v12 }
  0xb9   : > { %3270 = vrot.lane.b32.xlu0 %v5775_v23, %s3633_s10  ;;  %v1541_v63 = vrot.slane %v4384_v17, 6  ;;  %v5777_v29 = vrot.slane %v4222_v32, 1  ;;  %v4565_v14 = vsel %vm364_vm1, %v414_v4, %v416_v3  ;;  %v5739_v60 = vrot.slane %v4391_v2, 6  ;;  %v4580_v23 = vld [vmem:[%s3687_s22 + $0x78] sm:$0xff]  }
  0xba   : > { %v4541_v31 = vpop.permute.xlu1 %2995  ;;  %v4551_v11 = vsel %vm1317_vm4, %v5776_v41, %v1359_v52  ;;  %v5778_v6 = vpack.i.bf16 %v4316_v59, %v4311_v16  ;;  %v3314_v12 = vpack.i.bf16 %v4522_v5, %v4509_v46  ;;  %v4574_v52 = vpack.i.bf16 %v1070_v47, %v1068_v33 }
  0xbb   : > { %v4557_v55 = vpop.permute.xlu0 %2990  ;;  %v4562_v40 = vsel %vm364_vm1, %v5777_v29, %v414_v4  ;;  %v4577_v36 = vunpack.c.h.bf16 %v4439_v48  ;;  %v5779_v4 = vpack.i.bf16 %v4324_v39, %v4319_v53  ;;  %v4586_v41 = vpack.i.bf16 %v1074_v21, %v1072_v42 }
  0xbc   : > { %3285 = vrot.lane.b32.xlu1 %v5778_v6, %s3627_s24  ;;  %v5780_v5 = vrot.slane %v4222_v32, 6  ;;  %v418_v53 = vrot.slane %v4454_v7, 1  ;;  %v5740_v39 = vrot.slane %v4457_v56, 1  ;;  %v4608_v42 = vsel %vm1499_vm5, %v1541_v63, %v5739_v60 }
  0xbd   : > { %3280 = vrot.lane.b32.xlu0 %v5779_v4, %s3633_s10  ;;  %v4613_v6 = vunpack.c.l.bf16 %v4580_v23  ;;  %v2968_v4 = vunpack.i.h.bf16 %v4434_v24  ;;  %v2957_v35 = vunpack.i.l.bf16 %v4418_v13  ;;  %v2978_v48 = vunpack.i.h.bf16 %v4461_v57 }
  0xbe   : > { %v4592_v46 = vpop.permute.xlu1 %3005  ;;  %v4599_v33 = vsel %vm1499_vm5, %v5780_v5, %v1541_v63  ;;  %v2967_v5 = vunpack.i.l.bf16 %v4434_v24  ;;  %v2958_v63 = vunpack.i.h.bf16 %v4418_v13  ;;  %v2977_v59 = vunpack.i.l.bf16 %v4461_v57 }
  0xbf   : > { %v4603_v47 = vpop.permute.xlu0 %3000  ;;  %v2973_v24 = vunpack.i.h.bf16 %v4464_v58  ;;  %v2972_v0 = vunpack.i.l.bf16 %v4464_v58  ;;  %v4632_v49 = vsel %vm364_vm1, %v416_v3, %v418_v53  ;;  %v4637_v13 = vsel %vm364_vm1, %v418_v53, %v5740_v39 }
  0xc0   : > { %3295 = vrot.lane.b32.xlu1 %v4360_v27, %s3626_s23  ;;  %v2988_v28 = vunpack.i.h.bf16 %v4494_v38  ;;  %v2987_v57 = vunpack.i.l.bf16 %v4494_v38  ;;  %v1689_v58 = vsel %vm1681_vm6, %v3743_v44, %v2968_v4  ;;  %v1688_v3 = vsel %vm1681_vm6, %v3705_v10, %v2967_v5 }
  0xc1   : > { %3290 = vrot.lane.b32.xlu0 %v4238_v30, %s3626_s23  ;;  %v2983_v21 = vunpack.i.h.bf16 %v4501_v45  ;;  %v2982_v53 = vunpack.i.l.bf16 %v4501_v45  ;;  %v1687_v38 = vsel %vm1681_vm6, %v3703_v9, %v2958_v63  ;;  %v1686_v39 = vsel %vm1681_vm6, %v3701_v8, %v2957_v35 }
  0xc2   : > { %v4629_v29 = vpop.permute.xlu1 %3015  ;;  %v1725_v60 = vsel %vm1718_vm7, %v1688_v3, %v2977_v59  ;;  %v1726_v44 = vsel %vm1718_vm7, %v1689_v58, %v2978_v48  ;;  %v1724_v10 = vsel %vm1718_vm7, %v1687_v38, %v2973_v24  ;;  %v1723_v45 = vsel %vm1718_vm7, %v1686_v39, %v2972_v0 }
  0xc3   : > { %v3011_v16 = vpop.permute.xlu0 %3010  ;;  %v2993_v4 = vunpack.i.h.bf16 %v4557_v55  ;;  %v2992_v5 = vunpack.i.l.bf16 %v4557_v55  ;;  %v1762_v9 = vsel %vm1755_vm8, %v1725_v60, %v2987_v57  ;;  %v1763_v8 = vsel %vm1755_vm8, %v1726_v44, %v2988_v28 }
  0xc4   : > { %3305 = vrot.lane.b32.xlu1 %v4517_v25, %s3628_s25  ;;  %v3003_v35 = vunpack.i.h.bf16 %v4603_v47  ;;  %v3002_v59 = vunpack.i.l.bf16 %v4603_v47  ;;  %v1761_v63 = vsel %vm1755_vm8, %v1724_v10, %v2983_v21  ;;  %v3013_v24 = vunpack.i.h.bf16 %v3011_v16 }
  0xc5   : > { %3300 = vrot.lane.b32.xlu0 %v4360_v27, %s3628_s25  ;;  %v1760_v27 = vsel %vm1755_vm8, %v1723_v45, %v2982_v53  ;;  %v3012_v0 = vunpack.i.l.bf16 %v3011_v16  ;;  %v2998_v55 = vunpack.i.h.bf16 %v4541_v31  ;;  %v2997_v39 = vunpack.i.l.bf16 %v4541_v31 }
  0xc6   : > { %v3026_v30 = vpop.permute.xlu1 %3025  ;;  %v1797_v28 = vsel %vm1792_vm9, %v1760_v27, %v2992_v5  ;;  %v1798_v47 = vsel %vm1792_vm9, %v1761_v63, %v2993_v4  ;;  %v3008_v21 = vunpack.i.h.bf16 %v4592_v46  ;;  %v3007_v16 = vunpack.i.l.bf16 %v4592_v46 }
  0xc7   : > { %v3021_v48 = vpop.permute.xlu0 %3020  ;;  %v1834_v58 = vsel %vm1829_vm10, %v1797_v28, %v3002_v59  ;;  %v1835_v31 = vsel %vm1829_vm10, %v1798_v47, %v3003_v35  ;;  %v3018_v3 = vunpack.i.h.bf16 %v4629_v29  ;;  %v3017_v53 = vunpack.i.l.bf16 %v4629_v29 }
  0xc8   : > { %3315 = vrot.lane.b32.xlu1 %v3314_v12, %s3629_s28  ;;  %v3023_v60 = vunpack.i.h.bf16 %v3021_v48  ;;  %v3022_v57 = vunpack.i.l.bf16 %v3021_v48  ;;  %v1871_v18 = vsel %vm1866_vm11, %v1834_v58, %v3012_v0  ;;  %v3028_v46 = vunpack.i.h.bf16 %v3026_v30 }
  0xc9   : > { %3310 = vrot.lane.b32.xlu0 %v3309_v26, %s3629_s28  ;;  %v1872_v26 = vsel %vm1866_vm11, %v1835_v31, %v3013_v24  ;;  %v3027_v10 = vunpack.i.l.bf16 %v3026_v30  ;;  %v1799_v29 = vsel %vm1792_vm9, %v1762_v9, %v2997_v39  ;;  %v1800_v5 = vsel %vm1792_vm9, %v1763_v8, %v2998_v55 }
  0xca   : > { %v4680_v12 = vpop.permute.xlu1 %3035  ;;  %v1908_v45 = vsel %vm1903_vm12, %v1871_v18, %v3022_v57  ;;  %v1909_v4 = vsel %vm1903_vm12, %v1872_v26, %v3023_v60  ;;  %v1836_v27 = vsel %vm1829_vm10, %v1799_v29, %v3007_v16  ;;  %v1837_v30 = vsel %vm1829_vm10, %v1800_v5, %v3008_v21  ;;  %v4704_v60 = vld [vmem:[%s3687_s22 + $0x80] sm:$0xff]  }
  0xcb   : > { %v3031_v34 = vpop.permute.xlu0 %3030  ;;  %v891_v0 = vrot.slane %v4457_v56, 3  ;;  %v1874_v9 = vsel %vm1866_vm11, %v1837_v30, %v3018_v3  ;;  %v893_v28 = vrot.slane %v4577_v36, 3  ;;  %v5743_v47 = vrot.slane %v4613_v6, 3 }
  0xcc   : > { %v3033_v38 = vunpack.i.h.bf16 %v3031_v34  ;;  %v3032_v44 = vunpack.i.l.bf16 %v3031_v34  ;;  %3325 = vrot.lane.b32.xlu1 %v4574_v52, %s3630_s5  ;;  %v1911_v57 = vsel %vm1903_vm12, %v1874_v9, %v3028_v46  ;;  %v4722_v31 = vunpack.c.h.bf16 %v4580_v23 }
  0xcd   : > { %3320 = vrot.lane.b32.xlu0 %v4340_v43, %s3630_s5  ;;  %v1873_v43 = vsel %vm1866_vm11, %v1836_v27, %v3017_v53  ;;  %v4725_v3 = vunpack.c.l.bf16 %v4704_v60  ;;  %v3349_v34 = vpack.i.bf16 %v4608_v42, %v4599_v33  ;;  %v3364_v18 = vpack.i.bf16 %v4637_v13, %v4632_v49 }
  0xce   : > { %v1945_v35 = vsel %vm1940_vm13, %v1908_v45, %v3032_v44  ;;  %v1946_v59 = vsel %vm1940_vm13, %v1909_v4, %v3033_v38  ;;  %v4698_v48 = vpop.permute.xlu1 %3045  ;;  %v1910_v39 = vsel %vm1903_vm12, %v1873_v43, %v3027_v10  ;;  %v5781_v26 = vrot.slane %v4454_v7, 6 }
  0xcf   : > { %v3041_v63 = vpop.permute.xlu0 %3040  ;;  %v1979_v24 = vpack.c.bf16 %v1946_v59, %v1945_v35  ;;  %v5782_v38 = vrot.slane %v4391_v2, 6  ;;  %v5783_v23 = vpack.i.bf16 %v4546_v22, %v4539_v37  ;;  %v5784_v46 = vrot.slane %v4457_v56, 6 }
  0xd0   : > { %v3043_v8 = vunpack.i.h.bf16 %v3041_v63  ;;  %v3042_v55 = vunpack.i.l.bf16 %v3041_v63  ;;  %3335 = vrot.lane.b32.xlu1 %v4586_v41, %s3631_s8  ;;  %v5785_v10 = vmov %v5781_v26  ;;  %v5786_v42 = vrot.slane %v4454_v7, 2 }
  0xd1   : > { %3330 = vrot.lane.b32.xlu0 %v4574_v52, %s3631_s8  ;;  %2759 = vmatprep.mubr.msk.bf16.mxu0 %vm2022_vm14, %v1979_v24  ;;  %v1546_v44 = vsel %vm1499_vm5, %v5782_v38, %v5781_v26  ;;  %v1548_v33 = vsel %vm1499_vm5, %v5785_v10, %v5784_v46  ;;  %v5787_v49 = vrot.slane %v4391_v2, 2  ;;  %v5788_v45 = vrot.slane %v4457_v56, 2 }
  0xd2   : > { %v1948_v21 = vsel %vm1940_vm13, %v1911_v57, %v3043_v8  ;;  %v1947_v16 = vsel %vm1940_vm13, %v1910_v39, %v3042_v55  ;;  %v4719_v58 = vpop.permute.xlu1 %3055  ;;  %v5789_v4 = vmov %v5786_v42  ;;  %v5790_v37 = vrot.slane %v4577_v36, 2 }
  0xd3   : > { %v4727_v53 = vpop.permute.xlu0 %3050  ;;  %v1980_v52 = vpack.c.bf16 %v1948_v21, %v1947_v16  ;;  %v599_v13 = vsel %vm544_vm0, %v5787_v49, %v5786_v42  ;;  %v601_v29 = vsel %vm544_vm0, %v5789_v4, %v5788_v45  ;;  %v5791_v22 = vmov %v5788_v45 }
  0xd4   : > { %3345 = vrot.lane.b32.xlu1 %v5783_v23, %s3632_s9  ;;  %v603_v5 = vsel %vm544_vm0, %v5791_v22, %v5790_v37  ;;  %v5792_v35 = vpack.i.bf16 %v4554_v1, %v4551_v11  ;;  %v5793_v59 = vrot.slane %v4613_v6, 2  ;;  %v5794_v27 = vmov %v5790_v37 }
  0xd5   : > { %2760 = vmatmul.mubr.msk.bf16.gmra.mrb[4].mxu0 %vm2022_vm14, %v1980_v52  ;;  %v4773_v63 = vsel %vm839_vm2, %v891_v0, %v893_v28  ;;  %v889_v24 = vrot.slane %v4454_v7, 3  ;;  %v1075_v43 = vrot.slane %v4577_v36, 4  ;;  %v4782_v11 = vsel %vm839_vm2, %v893_v28, %v5743_v47 }
  0xd6   : > { %3340 = vrot.lane.b32.xlu0 %v5792_v35, %s3632_s9  ;;  %v605_v30 = vsel %vm544_vm0, %v5794_v27, %v5793_v59  ;;  %v4777_v9 = vpop.permute.xlu1 %3065  ;;  %v1077_v1 = vrot.slane %v4613_v6, 4  ;;  %v1079_v8 = vrot.slane %v4722_v31, 4  ;;  %v5742_v55 = vrot.slane %v4725_v3, 4 }
  0xd7   : > { %v4787_v39 = vpop.permute.xlu0 %3060  ;;  %v3359_v57 = vpack.i.bf16 %v1548_v33, %v1546_v44  ;;  %v4789_v21 = vpack.i.bf16 %v601_v29, %v599_v13  ;;  %v1369_v16 = vrot.slane %v4613_v6, 5  ;;  %v1367_v52 = vrot.slane %v4577_v36, 5 }
  0xd8   : > { %v5795_v28 = vpack.i.bf16 %v4565_v14, %v4562_v40  ;;  %v4797_v26 = vpack.i.bf16 %v605_v30, %v603_v5  ;;  %v1371_v38 = vrot.slane %v4722_v31, 5  ;;  %v5741_v23 = vrot.slane %v4725_v3, 5 }
  0xd9   : > { %v3394_v44 = vpack.i.bf16 %v4782_v11, %v4773_v63  ;;  %v5796_v46 = vrot.slane %v4391_v2, 3  ;;  %v4810_v33 = vsel %vm839_vm2, %v889_v24, %v891_v0  ;;  %v5797_v40 = vrot.slane %v4457_v56, 4 }
  0xda   : > { %3355 = vrot.lane.b32.xlu1 %v5795_v28, %s3627_s24  ;;  %3350 = vrot.lane.b32.xlu0 %v3349_v34, %s3633_s10  ;;  %v4815_v42 = vpop.permute.xlu1 %3075  ;;  %v1078_v49 = vsel %vm1021_vm3, %v1075_v43, %v1077_v1  ;;  %v1080_v34 = vsel %vm1021_vm3, %v1077_v1, %v1079_v8  ;;  %v1082_v13 = vsel %vm1021_vm3, %v1079_v8, %v5742_v55  ;;  %v422_v45 = vrot.slane %v4577_v36, 1 }
  0xdb   : > { %v4807_v10 = vsel %vm839_vm2, %v5796_v46, %v889_v24  ;;  %v1076_v14 = vsel %vm1021_vm3, %v5797_v40, %v1075_v43  ;;  %v4823_v4 = vpop.permute.xlu0 %3070  ;;  %v5798_v0 = vrot.slane %v4457_v56, 5  ;;  %v4831_v37 = vsel %vm1317_vm4, %v1367_v52, %v1369_v16 }
  0xdc   : > { %v424_v22 = vrot.slane %v4613_v6, 1  ;;  %v1549_v5 = vrot.slane %v4577_v36, 6  ;;  %v4837_v35 = vsel %vm1317_vm4, %v1369_v16, %v1371_v38  ;;  %v4842_v59 = vsel %vm1317_vm4, %v1371_v38, %v5741_v23 }
  0xdd   : > { %v4828_v29 = vsel %vm1317_vm4, %v5798_v0, %v1367_v52  ;;  %v1551_v27 = vrot.slane %v4613_v6, 6  ;;  %v426_v30 = vrot.slane %v4722_v31, 1  ;;  %v3389_v24 = vpack.i.bf16 %v4810_v33, %v4807_v10 }
  0xde   : > { %3365 = vrot.lane.b32.xlu1 %v3364_v18, %s3627_s24  ;;  %3360 = vrot.lane.b32.xlu0 %v3359_v57, %s3633_s10  ;;  %v4849_v43 = vpack.i.bf16 %v1078_v49, %v1076_v14  ;;  %v4851_v18 = vpack.i.bf16 %v1082_v13, %v1080_v34  ;;  %v4853_v1 = vpop.permute.xlu1 %3085  ;;  %v5799_v16 = vrot.slane %v4457_v56, 1  ;;  %v5744_v28 = vrot.slane %v4725_v3, 1 }
  0xdf   : > { %v1553_v57 = vrot.slane %v4722_v31, 6  ;;  %v4864_v38 = vpop.permute.xlu0 %3080  ;;  %v4869_v10 = vsel %vm364_vm1, %v422_v45, %v424_v22  ;;  %v5800_v33 = vrot.slane %v4457_v56, 6  ;;  %v5745_v14 = vrot.slane %v4725_v3, 6 }
  0xe0   : > { %v4860_v52 = vsel %vm364_vm1, %v5799_v16, %v422_v45  ;;  %v3048_v49 = vunpack.i.h.bf16 %v4698_v48  ;;  %v3047_v34 = vunpack.i.l.bf16 %v4698_v48  ;;  %v4882_v13 = vsel %vm1499_vm5, %v1549_v5, %v1551_v27 }
  0xe1   : > { %v4874_v40 = vsel %vm1499_vm5, %v5800_v33, %v1549_v5  ;;  %v4885_v45 = vsel %vm364_vm1, %v424_v22, %v426_v30  ;;  %v3038_v0 = vunpack.i.h.bf16 %v4680_v12  ;;  %v3037_v16 = vunpack.i.l.bf16 %v4680_v12 }
  0xe2   : > { %3375 = vrot.lane.b32.xlu1 %v4789_v21, %s3626_s23  ;;  %v3058_v33 = vunpack.i.h.bf16 %v4719_v58  ;;  %v3057_v23 = vunpack.i.l.bf16 %v4719_v58  ;;  %3370 = vrot.lane.b32.xlu0 %v4517_v25, %s3626_s23  ;;  %v3053_v48 = vunpack.i.h.bf16 %v4727_v53  ;;  %v3052_v55 = vunpack.i.l.bf16 %v4727_v53  ;;  %v4895_v5 = vpop.permute.xlu1 %3095 }
  0xe3   : > { %v4900_v22 = vsel %vm364_vm1, %v426_v30, %v5744_v28  ;;  %v4903_v12 = vsel %vm1499_vm5, %v1551_v27, %v1553_v57  ;;  %v3068_v47 = vunpack.i.h.bf16 %v4777_v9  ;;  %v3067_v58 = vunpack.i.l.bf16 %v4777_v9  ;;  %v3091_v8 = vpop.permute.xlu0 %3090 }
  0xe4   : > { %v4910_v25 = vsel %vm1499_vm5, %v1553_v57, %v5745_v14  ;;  %v1693_v46 = vsel %vm1681_vm6, %v3876_v20, %v3048_v49  ;;  %v1692_v30 = vsel %vm1681_vm6, %v3836_v51, %v3047_v34  ;;  %v3063_v27 = vunpack.i.h.bf16 %v4787_v39 }
  0xe5   : > { %v3062_v28 = vunpack.i.l.bf16 %v4787_v39  ;;  %v1691_v9 = vsel %vm1681_vm6, %v3834_v50, %v3038_v0  ;;  %v1690_v57 = vsel %vm1681_vm6, %v3761_v54, %v3037_v16  ;;  %v1729_v14 = vsel %vm1718_vm7, %v1692_v30, %v3057_v23 }
  0xe6   : > { %3385 = vrot.lane.b32.xlu1 %v4797_v26, %s3628_s25  ;;  %v1730_v20 = vsel %vm1718_vm7, %v1693_v46, %v3058_v33  ;;  %3380 = vrot.lane.b32.xlu0 %v4789_v21, %s3628_s25  ;;  %v1728_v51 = vsel %vm1718_vm7, %v1691_v9, %v3053_v48  ;;  %v1727_v39 = vsel %vm1718_vm7, %v1690_v57, %v3052_v55  ;;  %v3073_v49 = vunpack.i.h.bf16 %v4823_v4  ;;  %v3106_v53 = vpop.permute.xlu1 %3105 }
  0xe7   : > { %v3072_v34 = vunpack.i.l.bf16 %v4823_v4  ;;  %v1766_v50 = vsel %vm1755_vm8, %v1729_v14, %v3067_v58  ;;  %v1767_v54 = vsel %vm1755_vm8, %v1730_v20, %v3068_v47  ;;  %v3083_v23 = vunpack.i.h.bf16 %v4864_v38  ;;  %v3101_v0 = vpop.permute.xlu0 %3100 }
  0xe8   : > { %v3082_v46 = vunpack.i.l.bf16 %v4864_v38  ;;  %v1764_v21 = vsel %vm1755_vm8, %v1727_v39, %v3062_v28  ;;  %v1765_v16 = vsel %vm1755_vm8, %v1728_v51, %v3063_v27  ;;  %v3093_v33 = vunpack.i.h.bf16 %v3091_v8 }
  0xe9   : > { %v3092_v55 = vunpack.i.l.bf16 %v3091_v8  ;;  %v3078_v4 = vunpack.i.h.bf16 %v4815_v42  ;;  %v3077_v47 = vunpack.i.l.bf16 %v4815_v42  ;;  %v3103_v14 = vunpack.i.h.bf16 %v3101_v0 }
  0xea   : > { %3395 = vrot.lane.b32.xlu1 %v3394_v44, %s3629_s28  ;;  %v3102_v48 = vunpack.i.l.bf16 %v3101_v0  ;;  %3390 = vrot.lane.b32.xlu0 %v3389_v24, %s3629_s28  ;;  %v1801_v38 = vsel %vm1792_vm9, %v1764_v21, %v3072_v34  ;;  %v1802_v28 = vsel %vm1792_vm9, %v1765_v16, %v3073_v49  ;;  %v3088_v58 = vunpack.i.h.bf16 %v4853_v1  ;;  %v4950_v30 = vpop.permute.xlu1 %3115  ;;  %v2685_v21 = vld [vmem:[%s3687_s22 + $0x88] sm:$0xff]  }
  0xeb   : > { %v3087_v8 = vunpack.i.l.bf16 %v4853_v1  ;;  %v1838_v63 = vsel %vm1829_vm10, %v1801_v38, %v3082_v46  ;;  %v1839_v11 = vsel %vm1829_vm10, %v1802_v28, %v3083_v23  ;;  %v3098_v44 = vunpack.i.h.bf16 %v4895_v5  ;;  %v3111_v27 = vpop.permute.xlu0 %3110 }
  0xec   : > { %v3097_v42 = vunpack.i.l.bf16 %v4895_v5  ;;  %v1875_v24 = vsel %vm1866_vm11, %v1838_v63, %v3092_v55  ;;  %v1876_v9 = vsel %vm1866_vm11, %v1839_v11, %v3093_v33  ;;  %v3113_v57 = vunpack.i.h.bf16 %v3111_v27 }
  0xed   : > { %v3112_v20 = vunpack.i.l.bf16 %v3111_v27  ;;  %v3108_v1 = vunpack.i.h.bf16 %v3106_v53  ;;  %v3107_v51 = vunpack.i.l.bf16 %v3106_v53  ;;  %v1912_v39 = vsel %vm1903_vm12, %v1875_v24, %v3102_v48 }
  0xee   : > { %3405 = vrot.lane.b32.xlu1 %v4849_v43, %s3630_s5  ;;  %v1913_v49 = vsel %vm1903_vm12, %v1876_v9, %v3103_v14  ;;  %3400 = vrot.lane.b32.xlu0 %v4586_v41, %s3630_s5  ;;  %v1803_v5 = vsel %vm1792_vm9, %v1766_v50, %v3077_v47  ;;  %v1804_v34 = vsel %vm1792_vm9, %v1767_v54, %v3078_v4  ;;  %v4968_v0 = vpop.permute.xlu1 %3125  ;;  %v608_v41 = vrot.slane %v4725_v3, 2  ;;  %v4979_v14 = vld [vmem:[%s3687_s22 + $0x90] sm:$0xff]  }
  0xef   : > { %v1949_v23 = vsel %vm1940_vm13, %v1912_v39, %v3112_v20  ;;  %v1950_v46 = vsel %vm1940_vm13, %v1913_v49, %v3113_v57  ;;  %v1840_v53 = vsel %vm1829_vm10, %v1803_v5, %v3087_v8  ;;  %v1841_v16 = vsel %vm1829_vm10, %v1804_v34, %v3088_v58  ;;  %v3121_v55 = vpop.permute.xlu0 %3120 }
  0xf0   : > { %v1981_v33 = vpack.c.bf16 %v1950_v46, %v1949_v23  ;;  %v1877_v50 = vsel %vm1866_vm11, %v1840_v53, %v3097_v42  ;;  %v1878_v47 = vsel %vm1866_vm11, %v1841_v16, %v3098_v44  ;;  %v3123_v54 = vunpack.i.h.bf16 %v3121_v55 }
  0xf1   : > { %v3122_v4 = vunpack.i.l.bf16 %v3121_v55  ;;  %v1914_v48 = vsel %vm1903_vm12, %v1877_v50, %v3107_v51  ;;  %v1915_v38 = vsel %vm1903_vm12, %v1878_v47, %v3108_v1  ;;  %v4987_v28 = vunpack.c.h.bf16 %v4704_v60 }
  0xf2   : > { %3415 = vrot.lane.b32.xlu1 %v4851_v18, %s3631_s8  ;;  %3410 = vrot.lane.b32.xlu0 %v4849_v43, %s3631_s8  ;;  %v4989_v58 = vunpack.c.l.bf16 %v2685_v21  ;;  %v1952_v8 = vsel %vm1940_vm13, %v1915_v38, %v3123_v54  ;;  %v4993_v11 = vpop.permute.xlu1 %3135  ;;  %v3434_v27 = vpack.i.bf16 %v4869_v10, %v4860_v52  ;;  %v4999_v43 = vunpack.c.h.bf16 %v2685_v21 }
  0xf3   : > { %2763 = vmatprep.mubr.msk.bf16.mxu0 %vm2022_vm14, %v1981_v33  ;;  %v1951_v63 = vsel %vm1940_vm13, %v1914_v48, %v3122_v4  ;;  %v4995_v42 = vpop.permute.xlu0 %3130  ;;  %v5002_v24 = vunpack.c.l.bf16 %v4979_v14  ;;  %v5801_v60 = vpack.i.bf16 %v4842_v59, %v4837_v35  ;;  %v3429_v9 = vpack.i.bf16 %v4882_v13, %v4874_v40 }
  0xf4   : > { %v1982_v44 = vpack.c.bf16 %v1952_v8, %v1951_v63  ;;  %v3444_v57 = vpack.i.bf16 %v4900_v22, %v4885_v45  ;;  %v3439_v20 = vpack.i.bf16 %v4910_v25, %v4903_v12  ;;  %v5802_v52 = vpack.i.bf16 %v4831_v37, %v4828_v29 }
  0xf5   : > { %v5803_v10 = vrot.slane %v4722_v31, 2  ;;  %v5804_v35 = vrot.slane %v4613_v6, 2  ;;  %v610_v45 = vrot.slane %v4987_v28, 2  ;;  %v612_v22 = vrot.slane %v4989_v58, 2 }
  0xf6   : > { %3425 = vrot.lane.b32.xlu1 %v5801_v60, %s3632_s9  ;;  %3420 = vrot.lane.b32.xlu0 %v5802_v52, %s3632_s9  ;;  %v5029_v12 = vpop.permute.xlu1 %3145  ;;  %v899_v29 = vrot.slane %v4725_v3, 3  ;;  %v901_v37 = vrot.slane %v4987_v28, 3  ;;  %v5749_v25 = vrot.slane %v4989_v58, 3  ;;  %v897_v1 = vrot.slane %v4722_v31, 3 }
  0xf7   : > { %2764 = vmatmul.mubr.msk.bf16.gmra.mrb[8].mxu0 %vm2022_vm14, %v1982_v44  ;;  %v607_v59 = vsel %vm544_vm0, %v5804_v35, %v5803_v10  ;;  %v5805_v40 = vmov %v5803_v10  ;;  %v5035_v51 = vpop.permute.xlu0 %3140  ;;  %v1083_v39 = vrot.slane %v4987_v28, 4  ;;  %v1085_v49 = vrot.slane %v4989_v58, 4 }
  0xf8   : > { %v609_v13 = vsel %vm544_vm0, %v5805_v40, %v608_v41  ;;  %v1087_v5 = vrot.slane %v4999_v43, 4  ;;  %v5748_v34 = vrot.slane %v5002_v24, 4  ;;  %v1377_v46 = vrot.slane %v4989_v58, 5 }
  0xf9   : > { %v5042_v23 = vpack.i.bf16 %v609_v13, %v607_v59  ;;  %v1379_v21 = vrot.slane %v4999_v43, 5  ;;  %v5747_v53 = vrot.slane %v5002_v24, 5  ;;  %v611_v16 = vsel %vm544_vm0, %v608_v41, %v610_v45 }
  0xfa   : > { %3435 = vrot.lane.b32.xlu1 %v3434_v27, %s3627_s24  ;;  %3430 = vrot.lane.b32.xlu0 %v3429_v9, %s3633_s10  ;;  %v613_v33 = vsel %vm544_vm0, %v610_v45, %v612_v22  ;;  %v1375_v55 = vrot.slane %v4987_v28, 5  ;;  %v5053_v50 = vpop.permute.xlu1 %3155  ;;  %v5056_v47 = vsel %vm839_vm2, %v899_v29, %v901_v37  ;;  %v5061_v54 = vsel %vm839_vm2, %v901_v37, %v5749_v25 }
  0xfb   : > { %v5806_v4 = vrot.slane %v4613_v6, 3  ;;  %v5069_v48 = vsel %vm839_vm2, %v897_v1, %v899_v29  ;;  %v5071_v38 = vpop.permute.xlu0 %3150  ;;  %v5807_v8 = vrot.slane %v4725_v3, 4  ;;  %v1086_v44 = vsel %vm1021_vm3, %v1083_v39, %v1085_v49 }
  0xfc   : > { %v1088_v27 = vsel %vm1021_vm3, %v1085_v49, %v1087_v5  ;;  %v1090_v60 = vsel %vm1021_vm3, %v1087_v5, %v5748_v34  ;;  %v5083_v9 = vsel %vm1317_vm4, %v1377_v46, %v1379_v21  ;;  %v5088_v52 = vsel %vm1317_vm4, %v1379_v21, %v5747_v53  ;;  %v5811_v34 = vld [vmem:[#allocation2_spill] sm:$0xff] }
  0xfd   : > { %v5066_v41 = vsel %vm839_vm2, %v5806_v4, %v897_v1  ;;  %v1084_v63 = vsel %vm1021_vm3, %v5807_v8, %v1083_v39  ;;  %v1559_v10 = vrot.slane %v4989_v58, 6  ;;  %v1561_v35 = vrot.slane %v4999_v43, 6 }
  0xfe   : > { %3445 = vrot.lane.b32.xlu1 %v3444_v57, %s3627_s24  ;;  %3440 = vrot.lane.b32.xlu0 %v3439_v20, %s3633_s10  ;;  %v5093_v59 = vpack.i.bf16 %v613_v33, %v611_v16  ;;  %v3474_v40 = vpack.i.bf16 %v5061_v54, %v5056_v47  ;;  %v5808_v57 = vrot.slane %v4725_v3, 5  ;;  %v5103_v45 = vsel %vm1317_vm4, %v1375_v55, %v1377_v46  ;;  %v5105_v29 = vpop.permute.xlu1 %3165 }
  0xff   : > { %v3469_v37 = vpack.i.bf16 %v5069_v48, %v5066_v41  ;;  %v5109_v1 = vpack.i.bf16 %v1086_v44, %v1084_v63  ;;  %v5746_v20 = vrot.slane %v5002_v24, 6  ;;  %v3161_v39 = vpop.permute.xlu0 %3160  ;;  %v5112_v49 = vpack.i.bf16 %v1090_v60, %v1088_v27 }
 0x100   : > { %v5100_v13 = vsel %vm1317_vm4, %v5808_v57, %v1375_v55  ;;  %v3504_v5 = vpack.i.bf16 %v5088_v52, %v5083_v9  ;;  %v1557_v21 = vrot.slane %v4987_v28, 6  ;;  %v3128_v46 = vunpack.i.h.bf16 %v4968_v0 }
 0x101   : > { %v3127_v16 = vunpack.i.l.bf16 %v4968_v0  ;;  %v3499_v33 = vpack.i.bf16 %v5103_v45, %v5100_v13  ;;  %v5124_v55 = vsel %vm1499_vm5, %v1559_v10, %v1561_v35  ;;  %v3118_v47 = vunpack.i.h.bf16 %v4950_v30 }
 0x102   : > { %3455 = vrot.lane.b32.xlu1 %v5042_v23, %s3626_s23  ;;  %v3117_v54 = vunpack.i.l.bf16 %v4950_v30  ;;  %v3138_v4 = vunpack.i.h.bf16 %v4993_v11  ;;  %v3137_v41 = vunpack.i.l.bf16 %v4993_v11  ;;  %3450 = vrot.lane.b32.xlu0 %v4797_v26, %s3626_s23  ;;  %v3133_v0 = vunpack.i.h.bf16 %v4995_v42  ;;  %v5134_v8 = vpop.permute.xlu1 %3175 }
 0x103   : > { %v3132_v48 = vunpack.i.l.bf16 %v4995_v42  ;;  %v5139_v63 = vsel %vm1499_vm5, %v1561_v35, %v5746_v20  ;;  %v432_v30 = vrot.slane %v4989_v58, 1  ;;  %v3148_v44 = vunpack.i.h.bf16 %v5029_v12  ;;  %v3171_v27 = vpop.permute.xlu0 %3170 }
 0x104   : > { %v3147_v11 = vunpack.i.l.bf16 %v5029_v12  ;;  %v5809_v26 = vrot.slane %v4725_v3, 6  ;;  %v5150_v42 = vsel %vm1499_vm5, %v1557_v21, %v1559_v10  ;;  %v1697_v57 = vsel %vm1681_vm6, %v3969_v62, %v3128_v46  ;;  %v5810_v12 = vld [vmem:[#allocation3_spill] sm:$0xff] }
 0x105   : > { %v1696_v35 = vsel %vm1681_vm6, %v3946_v15, %v3127_v16  ;;  %v3143_v20 = vunpack.i.h.bf16 %v5035_v51  ;;  %v3142_v53 = vunpack.i.l.bf16 %v5035_v51  ;;  %v1694_v10 = vsel %vm1681_vm6, %v5811_v34, %v3117_v54 }
 0x106   : > { %v5147_v60 = vsel %vm1499_vm5, %v5809_v26, %v1557_v21  ;;  %3465 = vrot.lane.b32.xlu1 %v5093_v59, %s3628_s25  ;;  %v1695_v26 = vsel %vm1681_vm6, %v5810_v12, %v3118_v47  ;;  %v1733_v21 = vsel %vm1718_vm7, %v1696_v35, %v3137_v41  ;;  %v1734_v62 = vsel %vm1718_vm7, %v1697_v57, %v3138_v4  ;;  %v3186_v25 = vpop.permute.xlu1 %3185 }
 0x107   : > { %3460 = vrot.lane.b32.xlu0 %v5042_v23, %s3628_s25  ;;  %v1732_v15 = vsel %vm1718_vm7, %v1695_v26, %v3133_v0  ;;  %v1731_v51 = vsel %vm1718_vm7, %v1694_v10, %v3132_v48  ;;  %v3153_v46 = vunpack.i.h.bf16 %v5071_v38  ;;  %v3152_v16 = vunpack.i.l.bf16 %v5071_v38  ;;  %v3181_v35 = vpop.permute.xlu0 %3180 }
 0x108   : > { %v1770_v47 = vsel %vm1755_vm8, %v1733_v21, %v3147_v11  ;;  %v1771_v34 = vsel %vm1755_vm8, %v1734_v62, %v3148_v44  ;;  %v3163_v54 = vunpack.i.h.bf16 %v3161_v39  ;;  %v3162_v41 = vunpack.i.l.bf16 %v3161_v39 }
 0x109   : > { %v1768_v4 = vsel %vm1755_vm8, %v1731_v51, %v3142_v53  ;;  %v1769_v23 = vsel %vm1755_vm8, %v1732_v15, %v3143_v20  ;;  %v3173_v57 = vunpack.i.h.bf16 %v3171_v27  ;;  %v3172_v0 = vunpack.i.l.bf16 %v3171_v27 }
 0x10a   : > { %3475 = vrot.lane.b32.xlu1 %v3474_v40, %s3629_s28  ;;  %v3158_v48 = vunpack.i.h.bf16 %v5053_v50  ;;  %v3157_v38 = vunpack.i.l.bf16 %v5053_v50  ;;  %v3183_v12 = vunpack.i.h.bf16 %v3181_v35  ;;  %v3182_v26 = vunpack.i.l.bf16 %v3181_v35  ;;  %v5184_v11 = vpop.permute.xlu1 %3195 }
 0x10b   : > { %3470 = vrot.lane.b32.xlu0 %v3469_v37, %s3629_s28  ;;  %v1805_v44 = vsel %vm1792_vm9, %v1768_v4, %v3152_v16  ;;  %v1806_v39 = vsel %vm1792_vm9, %v1769_v23, %v3153_v46  ;;  %v3168_v53 = vunpack.i.h.bf16 %v5105_v29  ;;  %v3167_v20 = vunpack.i.l.bf16 %v5105_v29  ;;  %v3191_v21 = vpop.permute.xlu0 %3190 }
 0x10c   : > { %v1842_v40 = vsel %vm1829_vm10, %v1805_v44, %v3162_v41  ;;  %v1843_v27 = vsel %vm1829_vm10, %v1806_v39, %v3163_v54  ;;  %v3178_v50 = vunpack.i.h.bf16 %v5134_v8  ;;  %v3177_v10 = vunpack.i.l.bf16 %v5134_v8 }
 0x10d   : > { %v1879_v37 = vsel %vm1866_vm11, %v1842_v40, %v3172_v0  ;;  %v1880_v62 = vsel %vm1866_vm11, %v1843_v27, %v3173_v57  ;;  %v3193_v15 = vunpack.i.h.bf16 %v3191_v21  ;;  %v3192_v51 = vunpack.i.l.bf16 %v3191_v21  ;;  %v286_v40 = vld [vmem:[%s3687_s22 + $0xa0] sm:$0x3] }
 0x10e   : > { %3485 = vrot.lane.b32.xlu1 %v5109_v1, %s3630_s5  ;;  %v3188_v29 = vunpack.i.h.bf16 %v3186_v25  ;;  %v3187_v46 = vunpack.i.l.bf16 %v3186_v25  ;;  %v1916_v16 = vsel %vm1903_vm12, %v1879_v37, %v3182_v26  ;;  %v1917_v54 = vsel %vm1903_vm12, %v1880_v62, %v3183_v12  ;;  %v5202_v23 = vpop.permute.xlu1 %3205 }
 0x10f   : > { %3480 = vrot.lane.b32.xlu0 %v4851_v18, %s3630_s5  ;;  %v1807_v8 = vsel %vm1792_vm9, %v1770_v47, %v3157_v38  ;;  %v1808_v41 = vsel %vm1792_vm9, %v1771_v34, %v3158_v48  ;;  %v1953_v35 = vsel %vm1940_vm13, %v1916_v16, %v3192_v51  ;;  %v1954_v4 = vsel %vm1940_vm13, %v1917_v54, %v3193_v15  ;;  %v3201_v12 = vpop.permute.xlu0 %3200  ;;  %v2687_v18 = vld [vmem:[%s3687_s22 + $0x98] sm:$0xff]  }
 0x110   : > { %v1844_v57 = vsel %vm1829_vm10, %v1807_v8, %v3167_v20  ;;  %v1845_v25 = vsel %vm1829_vm10, %v1808_v41, %v3168_v53  ;;  %v1983_v0 = vpack.c.bf16 %v1954_v4, %v1953_v35  ;;  %v434_v26 = vrot.slane %v4999_v43, 1 }
 0x111   : > { %v1881_v47 = vsel %vm1866_vm11, %v1844_v57, %v3177_v10  ;;  %v1882_v34 = vsel %vm1866_vm11, %v1845_v25, %v3178_v50  ;;  %v3203_v48 = vunpack.i.h.bf16 %v3201_v12  ;;  %v3202_v38 = vunpack.i.l.bf16 %v3201_v12 }
 0x112   : > { %3495 = vrot.lane.b32.xlu1 %v5112_v49, %s3631_s8  ;;  %v1918_v44 = vsel %vm1903_vm12, %v1881_v47, %v3187_v46  ;;  %v1919_v39 = vsel %vm1903_vm12, %v1882_v34, %v3188_v29  ;;  %2767 = vmatprep.mubr.msk.bf16.mxu0 %vm2022_vm14, %v1983_v0  ;;  %v430_v53 = vrot.slane %v4987_v28, 1  ;;  %v5219_v20 = vunpack.c.h.bf16 %v4979_v14  ;;  %v5224_v10 = vpop.permute.xlu1 %3215 }
 0x113   : > { %3490 = vrot.lane.b32.xlu0 %v5109_v1, %s3631_s8  ;;  %v1956_v27 = vsel %vm1940_vm13, %v1919_v39, %v3203_v48  ;;  %v1955_v50 = vsel %vm1940_vm13, %v1918_v44, %v3202_v38  ;;  %v5226_v21 = vunpack.c.l.bf16 %v2687_v18  ;;  %v5228_v62 = vpop.permute.xlu0 %3210  ;;  %v3514_v1 = vpack.i.bf16 %v5139_v63, %v5124_v55 }
 0x114   : > { %v1984_v37 = vpack.c.bf16 %v1956_v27, %v1955_v50  ;;  %v3509_v15 = vpack.i.bf16 %v5150_v42, %v5147_v60  ;;  %v435_v14 = vsel %vm364_vm1, %v432_v30, %v434_v26  ;;  %v614_v51 = vrot.slane %v4999_v43, 2 }
 0x115   : > { %v5242_v29 = vunpack.c.h.bf16 %v2687_v18  ;;  %v5244_v46 = vunpack.c.l.bf16 %v286_v40  ;;  %v5812_v9 = vrot.slane %v4725_v3, 1  ;;  %v726_v55 = vrot.slane %v5002_v24, 2 }
 0x116   : > { %3505 = vrot.lane.b32.xlu1 %v3504_v5, %s3632_s9  ;;  %2768 = vmatmul.mubr.msk.bf16.gmra.mrb[12].mxu0 %vm2022_vm14, %v1984_v37  ;;  %v433_v5 = vsel %vm364_vm1, %v430_v53, %v432_v30  ;;  %v728_v63 = vrot.slane %v5219_v20, 2  ;;  %v5259_v60 = vpop.permute.xlu1 %3225  ;;  %v907_v42 = vrot.slane %v5002_v24, 3  ;;  %v909_v13 = vrot.slane %v5219_v20, 3 }
 0x117   : > { %3500 = vrot.lane.b32.xlu0 %v3499_v33, %s3632_s9  ;;  %v431_v52 = vsel %vm364_vm1, %v5812_v9, %v430_v53  ;;  %v911_v45 = vrot.slane %v5226_v21, 3  ;;  %v905_v33 = vrot.slane %v4999_v43, 3  ;;  %v5265_v16 = vpop.permute.xlu0 %3220  ;;  %v3524_v54 = vpack.i.bf16 %v434_v26, %v435_v14 }
 0x118   : > { %v1091_v8 = vrot.slane %v5219_v20, 4  ;;  %v1093_v30 = vrot.slane %v5226_v21, 4  ;;  %v3519_v41 = vpack.i.bf16 %v433_v5, %v431_v52  ;;  %v5273_v35 = vsel %vm544_vm0, %v612_v22, %v614_v51 }
 0x119   : > { %v1205_v4 = vrot.slane %v5242_v29, 4  ;;  %v1207_v57 = vrot.slane %v5244_v46, 4  ;;  %v727_v25 = vsel %vm544_vm0, %v614_v51, %v726_v55  ;;  %v1385_v0 = vrot.slane %v5226_v21, 5 }
 0x11a   : > { %3515 = vrot.lane.b32.xlu1 %v3514_v1, %s3633_s10  ;;  %v1387_v12 = vrot.slane %v5242_v29, 5  ;;  %v1389_v26 = vrot.slane %v5244_v46, 5  ;;  %v5282_v18 = vpop.permute.xlu1 %3235  ;;  %v729_v47 = vsel %vm544_vm0, %v726_v55, %v728_v63  ;;  %v5286_v22 = vsel %vm839_vm2, %v907_v42, %v909_v13 }
 0x11b   : > { %3510 = vrot.lane.b32.xlu0 %v3509_v15, %s3633_s10  ;;  %v5289_v34 = vsel %vm839_vm2, %v909_v13, %v911_v45  ;;  %v5813_v48 = vrot.slane %v4989_v58, 3  ;;  %v5296_v44 = vpop.permute.xlu0 %3230  ;;  %v5299_v39 = vsel %vm839_vm2, %v905_v33, %v907_v42  ;;  %v5814_v53 = vrot.slane %v5002_v24, 4 }
 0x11c   : > { %v1094_v27 = vsel %vm1021_vm3, %v1091_v8, %v1093_v30  ;;  %v1383_v50 = vrot.slane %v5219_v20, 5  ;;  %v3534_v37 = vpack.i.bf16 %v614_v51, %v5273_v35  ;;  %v5309_v1 = vsel %vm1021_vm3, %v1093_v30, %v1205_v4 }
 0x11d   : > { %v5294_v38 = vsel %vm839_vm2, %v5813_v48, %v905_v33  ;;  %v1092_v40 = vsel %vm1021_vm3, %v5814_v53, %v1091_v8  ;;  %v5312_v15 = vsel %vm1021_vm3, %v1205_v4, %v1207_v57  ;;  %v3544_v14 = vpack.i.bf16 %v728_v63, %v729_v47 }
 0x11e   : > { %3525 = vrot.lane.b32.xlu1 %v3524_v54, %s3627_s24  ;;  %v3539_v9 = vpack.i.bf16 %v727_v25, %v5273_v35  ;;  %v5317_v52 = vsel %vm1317_vm4, %v1385_v0, %v1387_v12  ;;  %v5320_v5 = vsel %vm1317_vm4, %v1387_v12, %v1389_v26  ;;  %v5322_v55 = vpop.permute.xlu1 %3245  ;;  %v3554_v51 = vpack.i.bf16 %v5289_v34, %v5286_v22 }
 0x11f   : > { %3520 = vrot.lane.b32.xlu0 %v3519_v41, %s3627_s24  ;;  %v3549_v42 = vpack.i.bf16 %v5299_v39, %v5294_v38  ;;  %v5328_v13 = vpack.i.bf16 %v1094_v27, %v1092_v40  ;;  %v3241_v45 = vpop.permute.xlu0 %3240  ;;  %v3574_v63 = vpack.i.bf16 %v5312_v15, %v5309_v1  ;;  %v5815_v33 = vrot.slane %v5002_v24, 5  ;;  %v5816_v39 = vld [vmem:[#allocation7_spill] sm:$0xff] }
 0x120   : > { %v5338_v8 = vsel %vm1317_vm4, %v1383_v50, %v1385_v0  ;;  %v3208_v30 = vunpack.i.h.bf16 %v5202_v23  ;;  %v3207_v41 = vunpack.i.l.bf16 %v5202_v23  ;;  %v1567_v4 = vrot.slane %v5226_v21, 6 }
 0x121   : > { %v5335_v54 = vsel %vm1317_vm4, %v5815_v33, %v1383_v50  ;;  %v3198_v57 = vunpack.i.h.bf16 %v5184_v11  ;;  %v3197_v25 = vunpack.i.l.bf16 %v5184_v11  ;;  %v3218_v12 = vunpack.i.h.bf16 %v5224_v10  ;;  %v5819_v33 = vld [vmem:[#allocation4_spill] sm:$0xff] }
 0x122   : > { %3535 = vrot.lane.b32.xlu1 %v3534_v37, %s3626_s23  ;;  %v3217_v0 = vunpack.i.l.bf16 %v5224_v10  ;;  %v3213_v23 = vunpack.i.h.bf16 %v5228_v62  ;;  %v3212_v26 = vunpack.i.l.bf16 %v5228_v62  ;;  %v5354_v47 = vpop.permute.xlu1 %3255  ;;  %v1569_v34 = vrot.slane %v5242_v29, 6  ;;  %v5817_v62 = vld [vmem:[#allocation6_spill] sm:$0xff]  ;;  %v5818_v37 = vld [vmem:[#allocation5_spill] sm:$0xff] }
 0x123   : > { %3530 = vrot.lane.b32.xlu0 %v5093_v59, %s3626_s23  ;;  %v3228_v11 = vunpack.i.h.bf16 %v5259_v60  ;;  %v3227_v48 = vunpack.i.l.bf16 %v5259_v60  ;;  %v3251_v38 = vpop.permute.xlu0 %3250  ;;  %v1571_v10 = vrot.slane %v5244_v46, 6  ;;  %v1701_v53 = vsel %vm1681_vm6, %v5816_v39, %v3208_v30 }
 0x124   : > { %v1700_v40 = vsel %vm1681_vm6, %v5817_v62, %v3207_v41  ;;  %v3223_v27 = vunpack.i.h.bf16 %v5265_v16  ;;  %v3222_v50 = vunpack.i.l.bf16 %v5265_v16  ;;  %v1699_v60 = vsel %vm1681_vm6, %v5818_v37, %v3198_v57 }
 0x125   : > { %v1698_v22 = vsel %vm1681_vm6, %v5819_v33, %v3197_v25  ;;  %v1737_v35 = vsel %vm1718_vm7, %v1700_v40, %v3217_v0  ;;  %v1738_v59 = vsel %vm1718_vm7, %v1701_v53, %v3218_v12  ;;  %v1736_v30 = vsel %vm1718_vm7, %v1699_v60, %v3213_v23 }
 0x126   : > { %3545 = vrot.lane.b32.xlu1 %v3544_v14, %s3628_s25  ;;  %v1735_v41 = vsel %vm1718_vm7, %v1698_v22, %v3212_v26  ;;  %v3233_v16 = vunpack.i.h.bf16 %v5296_v44  ;;  %v3232_v14 = vunpack.i.l.bf16 %v5296_v44  ;;  %v3266_v39 = vpop.permute.xlu1 %3265  ;;  %v1774_v57 = vsel %vm1755_vm8, %v1737_v35, %v3227_v48 }
 0x127   : > { %3540 = vrot.lane.b32.xlu0 %v3539_v9, %s3628_s25  ;;  %v1775_v62 = vsel %vm1755_vm8, %v1738_v59, %v3228_v11  ;;  %v3243_v25 = vunpack.i.h.bf16 %v3241_v45  ;;  %v3242_v37 = vunpack.i.l.bf16 %v3241_v45  ;;  %v3261_v0 = vpop.permute.xlu0 %3260  ;;  %v1772_v12 = vsel %vm1755_vm8, %v1735_v41, %v3222_v50 }
 0x128   : > { %v1773_v9 = vsel %vm1755_vm8, %v1736_v30, %v3223_v27  ;;  %v3253_v53 = vunpack.i.h.bf16 %v3251_v38  ;;  %v3252_v23 = vunpack.i.l.bf16 %v3251_v38  ;;  %v3238_v26 = vunpack.i.h.bf16 %v5282_v18 }
 0x129   : > { %v3237_v44 = vunpack.i.l.bf16 %v5282_v18  ;;  %v3263_v22 = vunpack.i.h.bf16 %v3261_v0  ;;  %v3262_v40 = vunpack.i.l.bf16 %v3261_v0  ;;  %v1809_v35 = vsel %vm1792_vm9, %v1772_v12, %v3232_v14 }
 0x12a   : > { %3555 = vrot.lane.b32.xlu1 %v3554_v51, %s3629_s28  ;;  %v1810_v45 = vsel %vm1792_vm9, %v1773_v9, %v3233_v16  ;;  %v3248_v11 = vunpack.i.h.bf16 %v5322_v55  ;;  %v3247_v48 = vunpack.i.l.bf16 %v5322_v55  ;;  %v5393_v59 = vpop.permute.xlu1 %3275  ;;  %v1846_v51 = vsel %vm1829_vm10, %v1809_v35, %v3242_v37 }
 0x12b   : > { %3550 = vrot.lane.b32.xlu0 %v3549_v42, %s3629_s28  ;;  %v1847_v38 = vsel %vm1829_vm10, %v1810_v45, %v3243_v25  ;;  %v3258_v18 = vunpack.i.h.bf16 %v5354_v47  ;;  %v3257_v27 = vunpack.i.l.bf16 %v5354_v47  ;;  %v3271_v50 = vpop.permute.xlu0 %3270  ;;  %v1883_v42 = vsel %vm1866_vm11, %v1846_v51, %v3252_v23 }
 0x12c   : > { %v1884_v60 = vsel %vm1866_vm11, %v1847_v38, %v3253_v53  ;;  %v3273_v33 = vunpack.i.h.bf16 %v3271_v50  ;;  %v3272_v30 = vunpack.i.l.bf16 %v3271_v50  ;;  %v3268_v55 = vunpack.i.h.bf16 %v3266_v39 }
 0x12d   : > { %v3267_v41 = vunpack.i.l.bf16 %v3266_v39  ;;  %v1920_v16 = vsel %vm1903_vm12, %v1883_v42, %v3262_v40  ;;  %v1921_v14 = vsel %vm1903_vm12, %v1884_v60, %v3263_v22  ;;  %v1811_v47 = vsel %vm1792_vm9, %v1774_v57, %v3237_v44 }
 0x12e   : > { %3565 = vrot.lane.b32.xlu1 %v5328_v13, %s3630_s5  ;;  %v1812_v25 = vsel %vm1792_vm9, %v1775_v62, %v3238_v26  ;;  %v1957_v37 = vsel %vm1940_vm13, %v1920_v16, %v3272_v30  ;;  %v1958_v0 = vsel %vm1940_vm13, %v1921_v14, %v3273_v33  ;;  %v3286_v12 = vpop.permute.xlu1 %3285  ;;  %v1848_v9 = vsel %vm1829_vm10, %v1811_v47, %v3247_v48 }
 0x12f   : > { %3560 = vrot.lane.b32.xlu0 %v5112_v49, %s3630_s5  ;;  %v1849_v39 = vsel %vm1829_vm10, %v1812_v25, %v3248_v11  ;;  %v1985_v53 = vpack.c.bf16 %v1958_v0, %v1957_v37  ;;  %v3281_v23 = vpop.permute.xlu0 %3280  ;;  %v1570_v49 = vsel %vm1499_vm5, %v1567_v4, %v1569_v34  ;;  %v1885_v57 = vsel %vm1866_vm11, %v1848_v9, %v3257_v27 }
 0x130   : > { %v1886_v62 = vsel %vm1866_vm11, %v1849_v39, %v3258_v18  ;;  %v3283_v26 = vunpack.i.h.bf16 %v3281_v23  ;;  %v3282_v44 = vunpack.i.l.bf16 %v3281_v23  ;;  %v1922_v22 = vsel %vm1903_vm12, %v1885_v57, %v3267_v41 }
 0x131   : > { %v1923_v40 = vsel %vm1903_vm12, %v1886_v62, %v3268_v55  ;;  %2771 = vmatprep.mubr.msk.bf16.mxu0 %vm2022_vm14, %v1985_v53  ;;  %v1572_v35 = vsel %vm1499_vm5, %v1569_v34, %v1571_v10  ;;  %v5821_v11 = vrot.slane %v5002_v24, 6  ;;  %v5823_v34 = vpack.i.bf16 %v5320_v5, %v5317_v52 }
 0x132   : > { %3575 = vrot.lane.b32.xlu1 %v3574_v63, %s3631_s8  ;;  %v1960_v45 = vsel %vm1940_vm13, %v1923_v40, %v3283_v26  ;;  %v1959_v1 = vsel %vm1940_vm13, %v1922_v22, %v3282_v44  ;;  %v3296_v15 = vpop.permute.xlu1 %3295  ;;  %v5820_v63 = vrot.slane %v5219_v20, 6  ;;  %v3594_v10 = vpack.i.bf16 %v1572_v35, %v1570_v49 }
 0x133   : > { %3570 = vrot.lane.b32.xlu0 %v5328_v13, %s3631_s8  ;;  %v1986_v29 = vpack.c.bf16 %v1960_v45, %v1959_v1  ;;  %v3291_v51 = vpop.permute.xlu0 %3290  ;;  %v5824_v24 = vpack.i.bf16 %v5338_v8, %v5335_v54  ;;  %v3288_v27 = vunpack.i.h.bf16 %v3286_v12  ;;  %v3287_v50 = vunpack.i.l.bf16 %v3286_v12  ;;  %v5825_v12 = vld [vmem:[#allocation9_spill] sm:$0xff] }
 0x134   : > { %v1566_v48 = vsel %vm1499_vm5, %v5821_v11, %v5820_v63  ;;  %v5822_v13 = vmov %v5820_v63  ;;  %v3278_v54 = vunpack.i.h.bf16 %v5393_v59  ;;  %v3277_v8 = vunpack.i.l.bf16 %v5393_v59  ;;  %v5826_v59 = vld [vmem:[#allocation8_spill] sm:$0xff] }
 0x135   : > { %v1568_v46 = vsel %vm1499_vm5, %v5822_v13, %v1567_v4  ;;  %2772 = vmatmul.mubr.msk.bf16.gmra.mrb[16].mxu0 %vm2022_vm14, %v1986_v29  ;;  %v3298_v42 = vunpack.i.h.bf16 %v3296_v15  ;;  %v3297_v60 = vunpack.i.l.bf16 %v3296_v15  ;;  %v3293_v33 = vunpack.i.h.bf16 %v3291_v51 }
 0x136   : > { %3585 = vrot.lane.b32.xlu1 %v5823_v34, %s3632_s9  ;;  %v3589_v21 = vpack.i.bf16 %v1568_v46, %v1566_v48  ;;  %v3306_v38 = vpop.permute.xlu1 %3305  ;;  %v3292_v30 = vunpack.i.l.bf16 %v3291_v51  ;;  %v1705_v47 = vsel %vm1681_vm6, %v4219_v61, %v3288_v27  ;;  %v1704_v25 = vsel %vm1681_vm6, %v4135_v19, %v3287_v50 }
 0x137   : > { %3580 = vrot.lane.b32.xlu0 %v5824_v24, %s3632_s9  ;;  %v3301_v20 = vpop.permute.xlu0 %3300  ;;  %v3308_v41 = vunpack.i.h.bf16 %v3306_v38  ;;  %v3307_v16 = vunpack.i.l.bf16 %v3306_v38  ;;  %v1703_v9 = vsel %vm1681_vm6, %v5825_v12, %v3278_v54  ;;  %v1702_v39 = vsel %vm1681_vm6, %v5826_v59, %v3277_v8 }
 0x138   : > { %v3303_v37 = vunpack.i.h.bf16 %v3301_v20  ;;  %v3302_v0 = vunpack.i.l.bf16 %v3301_v20  ;;  %v1741_v53 = vsel %vm1718_vm7, %v1704_v25, %v3297_v60  ;;  %v1742_v23 = vsel %vm1718_vm7, %v1705_v47, %v3298_v42 }
 0x139   : > { %v1740_v49 = vsel %vm1718_vm7, %v1703_v9, %v3293_v33  ;;  %v1739_v57 = vsel %vm1718_vm7, %v1702_v39, %v3292_v30  ;;  %v1778_v19 = vsel %vm1755_vm8, %v1741_v53, %v3307_v16  ;;  %v1779_v44 = vsel %vm1755_vm8, %v1742_v23, %v3308_v41 }
 0x13a   : > { %3595 = vrot.lane.b32.xlu1 %v3594_v10, %s3633_s10  ;;  %v5457_v4 = vpop.permute.xlu1 %3315  ;;  %v1776_v45 = vsel %vm1755_vm8, %v1739_v57, %v3302_v0  ;;  %v1777_v1 = vsel %vm1755_vm8, %v1740_v49, %v3303_v37  ;;  %vm3637_vm1 = vmmov 1   ;;  %vm2309_vm3 = vcmask 244736  }
 0x13b   : > { %3590 = vrot.lane.b32.xlu0 %v3589_v21, %s3633_s10  ;;  %v3311_v18 = vpop.permute.xlu0 %3310  ;;  %v3318_v11 = vunpack.i.h.bf16 %v5457_v4  ;;  %v3317_v48 = vunpack.i.l.bf16 %v5457_v4  ;;  %vm2839_vm2 = vmpackc.low %vm544_vm0, %vm3637_vm1  ;;  %vm2456_vm4 = vcmask 1040384   ;;  %vm2457_vm5 = vsmask.f32 256 }
 0x13c   : > { %v3313_v61 = vunpack.i.h.bf16 %v3311_v18  ;;  %v3312_v62 = vunpack.i.l.bf16 %v3311_v18 }
 0x13d   : > { %v1815_v33 = vsel %vm1792_vm9, %v1778_v19, %v3317_v48  ;;  %v1816_v30 = vsel %vm1792_vm9, %v1779_v44, %v3318_v11 }
 0x13e   : > { %v5459_v52 = vpop.permute.xlu1 %3325  ;;  %v1813_v29 = vsel %vm1792_vm9, %v1776_v45, %v3312_v62  ;;  %v1814_v51 = vsel %vm1792_vm9, %v1777_v1, %v3313_v61 }
 0x13f   : > { %v3321_v5 = vpop.permute.xlu0 %3320  ;;  %v3328_v34 = vunpack.i.h.bf16 %v5459_v52  ;;  %v3327_v10 = vunpack.i.l.bf16 %v5459_v52 }
 0x140   : > { %v3323_v22 = vunpack.i.h.bf16 %v3321_v5  ;;  %v3322_v40 = vunpack.i.l.bf16 %v3321_v5 }
 0x141   : > { %v1853_v47 = vsel %vm1829_vm10, %v1816_v30, %v3328_v34 }
 0x142   : > { %v3336_v55 = vpop.permute.xlu1 %3335  ;;  %v1850_v21 = vsel %vm1829_vm10, %v1813_v29, %v3322_v40  ;;  %v1851_v38 = vsel %vm1829_vm10, %v1814_v51, %v3323_v22 }
 0x143   : > { %v3331_v14 = vpop.permute.xlu0 %3330  ;;  %v3338_v20 = vunpack.i.h.bf16 %v3336_v55  ;;  %v3337_v18 = vunpack.i.l.bf16 %v3336_v55 }
 0x144   : > { %v3333_v15 = vunpack.i.h.bf16 %v3331_v14  ;;  %v3332_v63 = vunpack.i.l.bf16 %v3331_v14  ;;  %v1852_v14 = vsel %vm1829_vm10, %v1815_v33, %v3327_v10 }
 0x145   : > { %v1889_v0 = vsel %vm1866_vm11, %v1852_v14, %v3337_v18  ;;  %v1890_v12 = vsel %vm1866_vm11, %v1853_v47, %v3338_v20 }
 0x146   : > { %v3346_v26 = vpop.permute.xlu1 %3345  ;;  %v1887_v4 = vsel %vm1866_vm11, %v1850_v21, %v3332_v63  ;;  %v1888_v27 = vsel %vm1866_vm11, %v1851_v38, %v3333_v15 }
 0x147   : > { %v3348_v8 = vunpack.i.h.bf16 %v3346_v26  ;;  %v3347_v42 = vunpack.i.l.bf16 %v3346_v26 }
 0x148   : > { %v3341_v35 = vpop.permute.xlu0 %3340 }
 0x149   : > { %v3343_v13 = vunpack.i.h.bf16 %v3341_v35  ;;  %v3342_v46 = vunpack.i.l.bf16 %v3341_v35  ;;  %v1926_v39 = vsel %vm1903_vm12, %v1889_v0, %v3347_v42  ;;  %v1927_v53 = vsel %vm1903_vm12, %v1890_v12, %v3348_v8 }
 0x14b   : > { %v1924_v60 = vsel %vm1903_vm12, %v1887_v4, %v3342_v46  ;;  %v1925_v52 = vsel %vm1903_vm12, %v1888_v27, %v3343_v13 }
 0x14c   : > { %v3356_v24 = vpop.permute.xlu1 %3355  ;;  %v3351_v5 = vpop.permute.xlu0 %3350 }
 0x14d   : > { %v3353_v50 = vunpack.i.h.bf16 %v3351_v5  ;;  %v3352_v54 = vunpack.i.l.bf16 %v3351_v5  ;;  %v3358_v15 = vunpack.i.h.bf16 %v3356_v24  ;;  %v3357_v63 = vunpack.i.l.bf16 %v3356_v24 }
 0x14f   : > { %v1961_v41 = vsel %vm1940_vm13, %v1924_v60, %v3352_v54  ;;  %v1962_v55 = vsel %vm1940_vm13, %v1925_v52, %v3353_v50  ;;  %v1707_v5 = vsel %vm1681_vm6, %v4384_v17, %v3358_v15  ;;  %v1706_v24 = vsel %vm1681_vm6, %v4222_v32, %v3357_v63 }
 0x150   : > { %v3366_v16 = vpop.permute.xlu1 %3365  ;;  %v1987_v25 = vpack.c.bf16 %v1962_v55, %v1961_v41  ;;  %v3361_v37 = vpop.permute.xlu0 %3360 }
 0x151   : > { %v3363_v9 = vunpack.i.h.bf16 %v3361_v37  ;;  %v3362_v59 = vunpack.i.l.bf16 %v3361_v37  ;;  %v3368_v45 = vunpack.i.h.bf16 %v3366_v16  ;;  %v3367_v1 = vunpack.i.l.bf16 %v3366_v16 }
 0x152   : > { %2775 = vmatprep.mubr.msk.bf16.mxu0 %vm2022_vm14, %v1987_v25 }
 0x153   : > { %v1964_v23 = vsel %vm1940_vm13, %v1927_v53, %v3363_v9  ;;  %v1963_v49 = vsel %vm1940_vm13, %v1926_v39, %v3362_v59  ;;  %v1709_v21 = vsel %vm1681_vm6, %v4454_v7, %v3368_v45  ;;  %v1708_v38 = vsel %vm1681_vm6, %v4391_v2, %v3367_v1 }
 0x154   : > { %v3376_v57 = vpop.permute.xlu1 %3375  ;;  %v1988_v61 = vpack.c.bf16 %v1964_v23, %v1963_v49  ;;  %v3371_v62 = vpop.permute.xlu0 %3370 }
 0x155   : > { %v3378_v11 = vunpack.i.h.bf16 %v3376_v57  ;;  %v3377_v48 = vunpack.i.l.bf16 %v3376_v57  ;;  %v3373_v13 = vunpack.i.h.bf16 %v3371_v62  ;;  %v3372_v46 = vunpack.i.l.bf16 %v3371_v62 }
 0x156   : > { %2776 = vmatmul.mubr.msk.bf16.gmra.mrb[20].mxu0 %vm2022_vm14, %v1988_v61 }
 0x157   : > { %v1745_v4 = vsel %vm1718_vm7, %v1708_v38, %v3377_v48  ;;  %v1746_v27 = vsel %vm1718_vm7, %v1709_v21, %v3378_v11  ;;  %v1744_v50 = vsel %vm1718_vm7, %v1707_v5, %v3373_v13  ;;  %v1743_v54 = vsel %vm1718_vm7, %v1706_v24, %v3372_v46 }
 0x158   : > { %v3386_v26 = vpop.permute.xlu1 %3385  ;;  %v3381_v19 = vpop.permute.xlu0 %3380 }
 0x159   : > { %v3388_v51 = vunpack.i.h.bf16 %v3386_v26  ;;  %v3387_v34 = vunpack.i.l.bf16 %v3386_v26  ;;  %v3383_v20 = vunpack.i.h.bf16 %v3381_v19  ;;  %v3382_v18 = vunpack.i.l.bf16 %v3381_v19 }
 0x15b   : > { %v1782_v2 = vsel %vm1755_vm8, %v1745_v4, %v3387_v34  ;;  %v1783_v60 = vsel %vm1755_vm8, %v1746_v27, %v3388_v51  ;;  %v1780_v32 = vsel %vm1755_vm8, %v1743_v54, %v3382_v18  ;;  %v1781_v30 = vsel %vm1755_vm8, %v1744_v50, %v3383_v20 }
 0x15c   : > { %v5505_v44 = vpop.permute.xlu1 %3395  ;;  %v3391_v22 = vpop.permute.xlu0 %3390 }
 0x15d   : > { %v3393_v7 = vunpack.i.h.bf16 %v3391_v22  ;;  %v3392_v8 = vunpack.i.l.bf16 %v3391_v22  ;;  %v3398_v16 = vunpack.i.h.bf16 %v5505_v44  ;;  %v3397_v14 = vunpack.i.l.bf16 %v5505_v44 }
 0x15f   : > { %v1817_v37 = vsel %vm1792_vm9, %v1780_v32, %v3392_v8  ;;  %v1818_v0 = vsel %vm1792_vm9, %v1781_v30, %v3393_v7  ;;  %v1819_v45 = vsel %vm1792_vm9, %v1782_v2, %v3397_v14  ;;  %v1820_v1 = vsel %vm1792_vm9, %v1783_v60, %v3398_v16 }
 0x160   : > { %v5507_v40 = vpop.permute.xlu1 %3405  ;;  %v3401_v35 = vpop.permute.xlu0 %3400 }
 0x161   : > { %v3403_v52 = vunpack.i.h.bf16 %v3401_v35  ;;  %v3402_v17 = vunpack.i.l.bf16 %v3401_v35  ;;  %v3408_v12 = vunpack.i.h.bf16 %v5507_v40  ;;  %v3407_v9 = vunpack.i.l.bf16 %v5507_v40 }
 0x163   : > { %v1854_v39 = vsel %vm1829_vm10, %v1817_v37, %v3402_v17  ;;  %v1855_v53 = vsel %vm1829_vm10, %v1818_v0, %v3403_v52  ;;  %v1856_v48 = vsel %vm1829_vm10, %v1819_v45, %v3407_v9  ;;  %v1857_v13 = vsel %vm1829_vm10, %v1820_v1, %v3408_v12 }
 0x164   : > { %v3416_v29 = vpop.permute.xlu1 %3415  ;;  %v3411_v10 = vpop.permute.xlu0 %3410 }
 0x165   : > { %v3413_v41 = vunpack.i.h.bf16 %v3411_v10  ;;  %v3412_v55 = vunpack.i.l.bf16 %v3411_v10  ;;  %v3418_v23 = vunpack.i.h.bf16 %v3416_v29  ;;  %v3417_v49 = vunpack.i.l.bf16 %v3416_v29 }
 0x167   : > { %v1891_v61 = vsel %vm1866_vm11, %v1854_v39, %v3412_v55  ;;  %v1892_v62 = vsel %vm1866_vm11, %v1855_v53, %v3413_v41  ;;  %v1893_v51 = vsel %vm1866_vm11, %v1856_v48, %v3417_v49  ;;  %v1894_v34 = vsel %vm1866_vm11, %v1857_v13, %v3418_v23 }
 0x168   : > { %v3426_v42 = vpop.permute.xlu1 %3425  ;;  %v3421_v33 = vpop.permute.xlu0 %3420 }
 0x169   : > { %v3423_v47 = vunpack.i.h.bf16 %v3421_v33  ;;  %v3422_v25 = vunpack.i.l.bf16 %v3421_v33  ;;  %v3428_v44 = vunpack.i.h.bf16 %v3426_v42  ;;  %v3427_v22 = vunpack.i.l.bf16 %v3426_v42 }
 0x16b   : > { %v1928_v35 = vsel %vm1903_vm12, %v1891_v61, %v3422_v25  ;;  %v1929_v40 = vsel %vm1903_vm12, %v1892_v62, %v3423_v47  ;;  %v1930_v38 = vsel %vm1903_vm12, %v1893_v51, %v3427_v22  ;;  %v1931_v20 = vsel %vm1903_vm12, %v1894_v34, %v3428_v44  ;;  %v5575_v34 = vld [vmem:[%s5717_s2] ss:$0 sm:$0xff] }
 0x16c   : > { %v3436_v59 = vpop.permute.xlu1 %3435  ;;  %v3431_v57 = vpop.permute.xlu0 %3430 }
 0x16d   : > { %v3433_v26 = vunpack.i.h.bf16 %v3431_v57  ;;  %v3432_v19 = vunpack.i.l.bf16 %v3431_v57  ;;  %v3438_v7 = vunpack.i.h.bf16 %v3436_v59  ;;  %v3437_v42 = vunpack.i.l.bf16 %v3436_v59 }
 0x16f   : > { %v1965_v15 = vsel %vm1940_vm13, %v1928_v35, %v3432_v19  ;;  %v1966_v63 = vsel %vm1940_vm13, %v1929_v40, %v3433_v26  ;;  %v1711_v41 = vsel %vm1681_vm6, %v4577_v36, %v3438_v7  ;;  %v1710_v16 = vsel %vm1681_vm6, %v4457_v56, %v3437_v42 }
 0x170   : > { %v3446_v11 = vpop.permute.xlu1 %3445  ;;  %v1989_v46 = vpack.c.bf16 %v1966_v63, %v1965_v15  ;;  %v3441_v29 = vpop.permute.xlu0 %3440 }
 0x171   : > { %v3443_v10 = vunpack.i.h.bf16 %v3441_v29  ;;  %v3442_v21 = vunpack.i.l.bf16 %v3441_v29  ;;  %v3447_v2 = vunpack.i.l.bf16 %v3446_v11  ;;  %v3448_v52 = vunpack.i.h.bf16 %v3446_v11 }
 0x172   : > { %2779 = vmatprep.mubr.msk.bf16.mxu0 %vm2022_vm14, %v1989_v46 }
 0x173   : > { %v1968_v18 = vsel %vm1940_vm13, %v1931_v20, %v3443_v10  ;;  %v1967_v5 = vsel %vm1940_vm13, %v1930_v38, %v3442_v21  ;;  %v1712_v14 = vsel %vm1681_vm6, %v4613_v6, %v3447_v2  ;;  %v1713_v0 = vsel %vm1681_vm6, %v4722_v31, %v3448_v52 }
 0x174   : > { %v3456_v24 = vpop.permute.xlu1 %3455  ;;  %v1990_v4 = vpack.c.bf16 %v1968_v18, %v1967_v5  ;;  %v3451_v27 = vpop.permute.xlu0 %3450 }
 0x175   : > { %v3457_v17 = vunpack.i.l.bf16 %v3456_v24  ;;  %v3458_v33 = vunpack.i.h.bf16 %v3456_v24  ;;  %v3453_v32 = vunpack.i.h.bf16 %v3451_v27  ;;  %v3452_v30 = vunpack.i.l.bf16 %v3451_v27 }
 0x176   : > { %2780 = vmatmul.mubr.msk.bf16.gmra.mrb[24].mxu0 %vm2022_vm14, %v1990_v4 }
 0x177   : > { %v1749_v12 = vsel %vm1718_vm7, %v1712_v14, %v3457_v17  ;;  %v1750_v39 = vsel %vm1718_vm7, %v1713_v0, %v3458_v33  ;;  %v1748_v36 = vsel %vm1718_vm7, %v1711_v41, %v3453_v32  ;;  %v1747_v53 = vsel %vm1718_vm7, %v1710_v16, %v3452_v30 }
 0x178   : > { %v3466_v50 = vpop.permute.xlu1 %3465 }
 0x179   : > { %v3461_v54 = vpop.permute.xlu0 %3460  ;;  %v3468_v47 = vunpack.i.h.bf16 %v3466_v50  ;;  %v3467_v25 = vunpack.i.l.bf16 %v3466_v50 }
 0x17a   : > { %v3463_v9 = vunpack.i.h.bf16 %v3461_v54  ;;  %v3462_v59 = vunpack.i.l.bf16 %v3461_v54 }
 0x17b   : > { %v1786_v62 = vsel %vm1755_vm8, %v1749_v12, %v3467_v25  ;;  %v1787_v31 = vsel %vm1755_vm8, %v1750_v39, %v3468_v47 }
 0x17c   : > { %v3476_v8 = vpop.permute.xlu1 %3475  ;;  %v1784_v22 = vsel %vm1755_vm8, %v1747_v53, %v3462_v59  ;;  %v1785_v35 = vsel %vm1755_vm8, %v1748_v36, %v3463_v9 }
 0x17d   : > { %v3471_v60 = vpop.permute.xlu0 %3470  ;;  %v3477_v56 = vunpack.i.l.bf16 %v3476_v8  ;;  %v3478_v23 = vunpack.i.h.bf16 %v3476_v8 }
 0x17e   : > { %v3473_v49 = vunpack.i.h.bf16 %v3471_v60  ;;  %v3472_v6 = vunpack.i.l.bf16 %v3471_v60 }
 0x17f   : > { %v1823_v1 = vsel %vm1792_vm9, %v1786_v62, %v3477_v56  ;;  %v1824_v48 = vsel %vm1792_vm9, %v1787_v31, %v3478_v23 }
 0x180   : > { %v3486_v55 = vpop.permute.xlu1 %3485  ;;  %v1821_v13 = vsel %vm1792_vm9, %v1784_v22, %v3472_v6  ;;  %v1822_v46 = vsel %vm1792_vm9, %v1785_v35, %v3473_v49 }
 0x181   : > { %v3481_v37 = vpop.permute.xlu0 %3480  ;;  %v3487_v57 = vunpack.i.l.bf16 %v3486_v55  ;;  %v3488_v26 = vunpack.i.h.bf16 %v3486_v55 }
 0x182   : > { %v3482_v19 = vunpack.i.l.bf16 %v3481_v37  ;;  %v3483_v40 = vunpack.i.h.bf16 %v3481_v37 }
 0x183   : > { %v1860_v29 = vsel %vm1829_vm10, %v1823_v1, %v3487_v57  ;;  %v1861_v10 = vsel %vm1829_vm10, %v1824_v48, %v3488_v26 }
 0x184   : > { %v3496_v61 = vpop.permute.xlu1 %3495  ;;  %v1858_v21 = vsel %vm1829_vm10, %v1821_v13, %v3482_v19  ;;  %v1859_v5 = vsel %vm1829_vm10, %v1822_v46, %v3483_v40 }
 0x185   : > { %v3491_v44 = vpop.permute.xlu0 %3490  ;;  %v3497_v45 = vunpack.i.l.bf16 %v3496_v61  ;;  %v3498_v15 = vunpack.i.h.bf16 %v3496_v61 }
 0x186   : > { %v3493_v63 = vunpack.i.h.bf16 %v3491_v44  ;;  %v3492_v11 = vunpack.i.l.bf16 %v3491_v44 }
 0x187   : > { %v1897_v24 = vsel %vm1866_vm11, %v1860_v29, %v3497_v45  ;;  %v1898_v54 = vsel %vm1866_vm11, %v1861_v10, %v3498_v15 }
 0x188   : > { %v3506_v51 = vpop.permute.xlu1 %3505  ;;  %v2757_v50 = vpop.f32.mrb[0].mxu0  ;;  %v1895_v7 = vsel %vm1866_vm11, %v1858_v21, %v3492_v11  ;;  %v1896_v8 = vsel %vm1866_vm11, %v1859_v5, %v3493_v63 }
 0x189   : > { %v3508_v38 = vunpack.i.h.bf16 %v3506_v51  ;;  %v3507_v20 = vunpack.i.l.bf16 %v3506_v51  ;;  %v3501_v18 = vpop.permute.xlu0 %3500  ;;  %v2123_v42 = vadd.f32 %v2757_v50, %v5575_v34  ;;  %v2114_v2 = vpop.f32.mrb[1].mxu0 }
 0x18a   : > { %v3503_v4 = vunpack.i.h.bf16 %v3501_v18  ;;  %v3502_v27 = vunpack.i.l.bf16 %v3501_v18  ;;  %v2115_v33 = vadd.f32 %v5575_v34, %v2114_v2  ;;  %v2758_v32 = vpop.f32.mrb[2].mxu0 }
 0x18b   : > { %v1934_v60 = vsel %vm1903_vm12, %v1897_v24, %v3507_v20  ;;  %v1935_v52 = vsel %vm1903_vm12, %v1898_v54, %v3508_v38  ;;  %v2126_v55 = vadd.f32 %v2758_v32, %v5575_v34  ;;  %v2117_v25 = vpop.f32.mrb[3].mxu0  ;;  %v2259_v37 = vmax.f32 %v2123_v42, 0.0 }
 0x18c   : > { %v1932_v17 = vsel %vm1903_vm12, %v1895_v7, %v3502_v27  ;;  %v3516_v30 = vpop.permute.xlu1 %3515  ;;  %v1933_v41 = vsel %vm1903_vm12, %v1896_v8, %v3503_v4  ;;  %v2118_v9 = vadd.f32 %v5575_v34, %v2117_v25  ;;  %v2257_v59 = vmax.f32 %v2115_v33, 0.0 }
 0x18d   : > { %v3518_v16 = vunpack.i.h.bf16 %v3516_v30  ;;  %v3517_v14 = vunpack.i.l.bf16 %v3516_v30  ;;  %v3511_v47 = vpop.permute.xlu0 %3510  ;;  %v2260_v39 = vmax.f32 %v2126_v55, 0.0 }
 0x18e   : > { %v3513_v0 = vunpack.i.h.bf16 %v3511_v47  ;;  %v3512_v12 = vunpack.i.l.bf16 %v3511_v47  ;;  %v2258_v6 = vmax.f32 %v2118_v9, 0.0 }
 0x18f   : > { %v1971_v36 = vsel %vm1940_vm13, %v1934_v60, %v3517_v14  ;;  %v1972_v53 = vsel %vm1940_vm13, %v1935_v52, %v3518_v16  ;;  %v5596_v61 = vpack.c.bf16 %v2260_v39, %v2259_v37 }
 0x190   : > { %v1992_v56 = vpack.c.bf16 %v1972_v53, %v1971_v36  ;;  %v1969_v23 = vsel %vm1940_vm13, %v1932_v17, %v3512_v12  ;;  %v1970_v49 = vsel %vm1940_vm13, %v1933_v41, %v3513_v0  ;;  %v3526_v57 = vpop.permute.xlu1 %3525  ;;  %v5598_v26 = vpack.c.bf16 %v2258_v6, %v2257_v59 }
 0x191   : > { %v1991_v62 = vpack.c.bf16 %v1970_v49, %v1969_v23  ;;  %v3521_v31 = vpop.permute.xlu0 %3520  ;;  %v3528_v40 = vunpack.i.h.bf16 %v3526_v57  ;;  %v3527_v1 = vunpack.i.l.bf16 %v3526_v57 }
 0x192   : > { %v3523_v15 = vunpack.i.h.bf16 %v3521_v31  ;;  %v3522_v11 = vunpack.i.l.bf16 %v3521_v31 }
 0x193   : > { %2783 = vmatprep.mubr.msk.bf16.mxu0 %vm2022_vm14, %v1991_v62  ;;  %v1717_v51 = vsel %vm1681_vm6, %v4999_v43, %v3528_v40  ;;  %v1716_v21 = vsel %vm1681_vm6, %v4989_v58, %v3527_v1 }
 0x194   : > { %2784 = vmatmul.mubr.msk.bf16.gmra.mrb[28].mxu0 %vm2022_vm14, %v1992_v56  ;;  %v3536_v19 = vpop.permute.xlu1 %3535  ;;  %v1715_v38 = vsel %vm1681_vm6, %v4987_v28, %v3523_v15  ;;  %v1714_v24 = vsel %vm1681_vm6, %v4725_v3, %v3522_v11  ;;  %vm2458_vm6 = vmand %vm2456_vm4, %vm2457_vm5 }
 0x195   : > { %v3531_v44 = vpop.permute.xlu0 %3530  ;;  %v3537_v48 = vunpack.i.l.bf16 %v3536_v19  ;;  %v3538_v13 = vunpack.i.h.bf16 %v3536_v19 }
 0x196   : > { %v3533_v46 = vunpack.i.h.bf16 %v3531_v44  ;;  %v3532_v29 = vunpack.i.l.bf16 %v3531_v44 }
 0x197   : > { %v1753_v4 = vsel %vm1718_vm7, %v1716_v21, %v3537_v48  ;;  %v1754_v54 = vsel %vm1718_vm7, %v1717_v51, %v3538_v13 }
 0x198   : > { %v3546_v22 = vpop.permute.xlu1 %3545  ;;  %v1751_v43 = vsel %vm1718_vm7, %v1714_v24, %v3532_v29  ;;  %v1752_v7 = vsel %vm1718_vm7, %v1715_v38, %v3533_v46 }
 0x199   : > { %v3541_v35 = vpop.permute.xlu0 %3540  ;;  %v3548_v20 = vunpack.i.h.bf16 %v3546_v22  ;;  %v3547_v18 = vunpack.i.l.bf16 %v3546_v22 }
 0x19a   : > { %v3543_v27 = vunpack.i.h.bf16 %v3541_v35  ;;  %v3542_v50 = vunpack.i.l.bf16 %v3541_v35 }
 0x19b   : > { %v1790_v52 = vsel %vm1755_vm8, %v1753_v4, %v3547_v18  ;;  %v1791_v3 = vsel %vm1755_vm8, %v1754_v54, %v3548_v20 }
 0x19c   : > { %v3556_v45 = vpop.permute.xlu1 %3555  ;;  %v1788_v30 = vsel %vm1755_vm8, %v1751_v43, %v3542_v50  ;;  %v1789_v41 = vsel %vm1755_vm8, %v1752_v7, %v3543_v27 }
 0x19d   : > { %v3551_v63 = vpop.permute.xlu0 %3550  ;;  %v3557_v58 = vunpack.i.l.bf16 %v3556_v45  ;;  %v3558_v8 = vunpack.i.h.bf16 %v3556_v45 }
 0x19e   : > { %v3553_v42 = vunpack.i.h.bf16 %v3551_v63  ;;  %v3552_v28 = vunpack.i.l.bf16 %v3551_v63 }
 0x19f   : > { %v1827_v14 = vsel %vm1792_vm9, %v1790_v52, %v3557_v58  ;;  %v1828_v0 = vsel %vm1792_vm9, %v1791_v3, %v3558_v8 }
 0x1a0   : > { %v3566_v10 = vpop.permute.xlu1 %3565  ;;  %v1825_v12 = vsel %vm1792_vm9, %v1788_v30, %v3552_v28  ;;  %v1826_v9 = vsel %vm1792_vm9, %v1789_v41, %v3553_v42 }
 0x1a1   : > { %v3561_v5 = vpop.permute.xlu0 %3560  ;;  %v3567_v2 = vunpack.i.l.bf16 %v3566_v10  ;;  %v3568_v17 = vunpack.i.h.bf16 %v3566_v10 }
 0x1a2   : > { %v3562_v33 = vunpack.i.l.bf16 %v3561_v5  ;;  %v3563_v55 = vunpack.i.h.bf16 %v3561_v5 }
 0x1a3   : > { %v1864_v59 = vsel %vm1829_vm10, %v1827_v14, %v3567_v2  ;;  %v1865_v36 = vsel %vm1829_vm10, %v1828_v0, %v3568_v17 }
 0x1a4   : > { %v3576_v60 = vpop.permute.xlu1 %3575  ;;  %v1862_v53 = vsel %vm1829_vm10, %v1825_v12, %v3562_v33  ;;  %v1863_v6 = vsel %vm1829_vm10, %v1826_v9, %v3563_v55 }
 0x1a5   : > { %v3571_v32 = vpop.permute.xlu0 %3570  ;;  %v3577_v16 = vunpack.i.l.bf16 %v3576_v60  ;;  %v3578_v47 = vunpack.i.h.bf16 %v3576_v60 }
 0x1a6   : > { %v3573_v25 = vunpack.i.h.bf16 %v3571_v32  ;;  %v3572_v37 = vunpack.i.l.bf16 %v3571_v32 }
 0x1a7   : > { %v1901_v57 = vsel %vm1866_vm11, %v1864_v59, %v3577_v16  ;;  %v1902_v44 = vsel %vm1866_vm11, %v1865_v36, %v3578_v47 }
 0x1a8   : > { %v3586_v39 = vpop.permute.xlu1 %3585  ;;  %v2761_v19 = vpop.f32.mrb[4].mxu0  ;;  %v1899_v22 = vsel %vm1866_vm11, %v1862_v53, %v3572_v37  ;;  %v1900_v35 = vsel %vm1866_vm11, %v1863_v6, %v3573_v25 }
 0x1a9   : > { %v3588_v56 = vunpack.i.h.bf16 %v3586_v39  ;;  %v3587_v23 = vunpack.i.l.bf16 %v3586_v39  ;;  %v3581_v49 = vpop.permute.xlu0 %3580  ;;  %v2139_v40 = vadd.f32 %v2761_v19, %v5575_v34  ;;  %v2130_v45 = vpop.f32.mrb[5].mxu0  ;;  %v2295_v19 = vlaneseq }
 0x1aa   : > { %v3583_v62 = vunpack.i.h.bf16 %v3581_v49  ;;  %v3582_v31 = vunpack.i.l.bf16 %v3581_v49  ;;  %v2131_v11 = vadd.f32 %v5575_v34, %v2130_v45  ;;  %v2762_v48 = vpop.f32.mrb[6].mxu0 }
 0x1ab   : > { %v1938_v1 = vsel %vm1903_vm12, %v1901_v57, %v3587_v23  ;;  %v1939_v15 = vsel %vm1903_vm12, %v1902_v44, %v3588_v56  ;;  %v2142_v29 = vadd.f32 %v2762_v48, %v5575_v34  ;;  %v2133_v38 = vpop.f32.mrb[7].mxu0  ;;  %v2263_v20 = vmax.f32 %v2139_v40, 0.0 }
 0x1ac   : > { %v1936_v63 = vsel %vm1903_vm12, %v1899_v22, %v3582_v31  ;;  %v3596_v13 = vpop.permute.xlu1 %3595  ;;  %v1937_v46 = vsel %vm1903_vm12, %v1900_v35, %v3583_v62  ;;  %v2134_v24 = vadd.f32 %v5575_v34, %v2133_v38  ;;  %v2261_v4 = vmax.f32 %v2131_v11, 0.0 }
 0x1ad   : > { %v3598_v51 = vunpack.i.h.bf16 %v3596_v13  ;;  %v3597_v10 = vunpack.i.l.bf16 %v3596_v13  ;;  %v3591_v21 = vpop.permute.xlu0 %3590  ;;  %v2264_v27 = vmax.f32 %v2142_v29, 0.0  ;;  %v2296_v44 = vshrl.u32 %v2295_v19, 7 }
 0x1ae   : > { %v3593_v18 = vunpack.i.h.bf16 %v3591_v21  ;;  %v3592_v5 = vunpack.i.l.bf16 %v3591_v21  ;;  %v2262_v8 = vmax.f32 %v2134_v24, 0.0 }
 0x1af   : > { %v1975_v50 = vsel %vm1940_vm13, %v1938_v1, %v3597_v10  ;;  %v1976_v54 = vsel %vm1940_vm13, %v1939_v15, %v3598_v51  ;;  %v5642_v42 = vpack.c.bf16 %v2264_v27, %v2263_v20  ;;  %v2301_v45 = vsub.s32 1, %v2296_v44 }
 0x1b0   : > { %v1994_v43 = vpack.c.bf16 %v1976_v54, %v1975_v50  ;;  %v1973_v7 = vsel %vm1940_vm13, %v1936_v63, %v3592_v5  ;;  %v1974_v58 = vsel %vm1940_vm13, %v1937_v46, %v3593_v18  ;;  %v5644_v2 = vpack.c.bf16 %v2262_v8, %v2261_v4  ;;  %v2293_v63 = vld [vmem:[%s5718_s3] sm:$0x7] }
 0x1b1   : > { %v1993_v28 = vpack.c.bf16 %v1974_v58, %v1973_v7  ;;  %v2297_v11 = vsub.s32 0, %v2296_v44  ;;  %v2302_v46 = vrot.slane %v2293_v63, %v2301_v45  ;;  %v2305_v38 = vsub.s32 2, %v2296_v44 }
 0x1b2   : > { %v3636_v45 = vmov 0.0  }
 0x1b3   : > { %2787 = vmatprep.mubr.msk.bf16.mxu0 %vm2022_vm14, %v1993_v28  ;;  %v5671_v51 = vrot.slane %v2293_v63, %v2297_v11  ;;  %2379 = vmatprep.mubr.f32.mxu1 %v2302_v46  ;;  %v5673_v24 = vrot.slane %v2293_v63, %v2305_v38 }
 0x1b4   : > { %2788 = vmatmul.mubr.msk.bf16.gmra.mrb[32].mxu0 %vm2022_vm14, %v1994_v43 }
 0x1ca   : > { %v2765_v60 = vpop.f32.mrb[8].mxu0 }
 0x1cb   : > { %v2155_v52 = vadd.f32 %v2765_v60, %v5575_v34  ;;  %v2146_v3 = vpop.f32.mrb[9].mxu0 }
 0x1cc   : > { %v2147_v17 = vadd.f32 %v5575_v34, %v2146_v3  ;;  %v2766_v33 = vpop.f32.mrb[10].mxu0 }
 0x1cd   : > { %v2158_v32 = vadd.f32 %v2766_v33, %v5575_v34  ;;  %v2149_v30 = vpop.f32.mrb[11].mxu0  ;;  %v2267_v55 = vmax.f32 %v2155_v52, 0.0 }
 0x1ce   : > { %v2150_v41 = vadd.f32 %v5575_v34, %v2149_v30  ;;  %v2265_v14 = vmax.f32 %v2147_v17, 0.0 }
 0x1cf   : > { %v2268_v16 = vmax.f32 %v2158_v32, 0.0 }
 0x1d0   : > { %v2266_v47 = vmax.f32 %v2150_v41, 0.0 }
 0x1d1   : > { %v5652_v25 = vpack.c.bf16 %v2268_v16, %v2267_v55 }
 0x1d2   : > { %v5654_v37 = vpack.c.bf16 %v2266_v47, %v2265_v14 }
 0x1e9   : > { %v2769_v0 = vpop.f32.mrb[12].mxu0 }
 0x1ea   : > { %v2171_v12 = vadd.f32 %v2769_v0, %v5575_v34  ;;  %v2162_v9 = vpop.f32.mrb[13].mxu0 }
 0x1eb   : > { %v2163_v59 = vadd.f32 %v5575_v34, %v2162_v9  ;;  %v2770_v39 = vpop.f32.mrb[14].mxu0 }
 0x1ec   : > { %v2174_v36 = vadd.f32 %v2770_v39, %v5575_v34  ;;  %v2165_v53 = vpop.f32.mrb[15].mxu0  ;;  %v2271_v23 = vmax.f32 %v2171_v12, 0.0 }
 0x1ed   : > { %v2166_v56 = vadd.f32 %v5575_v34, %v2165_v53  ;;  %v2269_v6 = vmax.f32 %v2163_v59, 0.0 }
 0x1ee   : > { %v2272_v49 = vmax.f32 %v2174_v36, 0.0 }
 0x1ef   : > { %v2270_v57 = vmax.f32 %v2166_v56, 0.0 }
 0x1f0   : > { %v5660_v62 = vpack.c.bf16 %v2272_v49, %v2271_v23 }
 0x1f1   : > { %v5662_v31 = vpack.c.bf16 %v2270_v57, %v2269_v6 }
 0x208   : > { %v2773_v22 = vpop.f32.mrb[16].mxu0 }
 0x209   : > { %v2187_v35 = vadd.f32 %v2773_v22, %v5575_v34  ;;  %v2178_v40 = vpop.f32.mrb[17].mxu0 }
 0x20a   : > { %v2179_v1 = vadd.f32 %v5575_v34, %v2178_v40  ;;  %v2774_v15 = vpop.f32.mrb[18].mxu0 }
 0x20b   : > { %v2190_v48 = vadd.f32 %v2774_v15, %v5575_v34  ;;  %v2181_v13 = vpop.f32.mrb[19].mxu0  ;;  %v2275_v10 = vmax.f32 %v2187_v35, 0.0 }
 0x20c   : > { %v2182_v29 = vadd.f32 %v5575_v34, %v2181_v13  ;;  %v2273_v20 = vmax.f32 %v2179_v1, 0.0 }
 0x20d   : > { %v2276_v21 = vmax.f32 %v2190_v48, 0.0 }
 0x20e   : > { %v2274_v18 = vmax.f32 %v2182_v29, 0.0 }
 0x20f   : > { %v2806_v5 = vpack.c.bf16 %v2276_v21, %v2275_v10 }
 0x210   : > { %v2802_v4 = vpack.c.bf16 %v2274_v18, %v2273_v20 }
 0x212   : > { %2803 = vmatprep.subr.bf16.mxu1 %v2802_v4 }
 0x213   : > { %2805 = vmatpush3.bf16.msra.mxu1 %v5598_v26 }
 0x214   : > { %2807 = vmatprep.subr.bf16.mxu1 %v2806_v5 }
 0x217   : > { %2809 = vmatpush3.bf16.msra.mxu1 %v5596_v61 }
 0x229   : > { %v2777_v27 = vpop.f32.mrb[20].mxu0 }
 0x22a   : > { %v2203_v50 = vadd.f32 %v2777_v27, %v5575_v34  ;;  %v2194_v54 = vpop.f32.mrb[21].mxu0 }
 0x22b   : > { %v2195_v43 = vadd.f32 %v5575_v34, %v2194_v54  ;;  %v2778_v7 = vpop.f32.mrb[22].mxu0 }
 0x22c   : > { %v2206_v58 = vadd.f32 %v2778_v7, %v5575_v34  ;;  %v2197_v8 = vpop.f32.mrb[23].mxu0  ;;  %v2279_v60 = vmax.f32 %v2203_v50, 0.0  ;;  %v2459_v50 = vld [vmem:[%s244_s21] sm:$0x1] }
 0x22d   : > { %v2198_v28 = vadd.f32 %v5575_v34, %v2197_v8  ;;  %v2277_v3 = vmax.f32 %v2195_v43, 0.0 }
 0x22e   : > { %v2280_v52 = vmax.f32 %v2206_v58, 0.0 }
 0x22f   : > { %v2278_v17 = vmax.f32 %v2198_v28, 0.0 }
 0x230   : > { %v2814_v26 = vpack.c.bf16 %v2280_v52, %v2279_v60 }
 0x231   : > { %v2810_v33 = vpack.c.bf16 %v2278_v17, %v2277_v3 }
 0x233   : > { %2811 = vmatprep.subr.bf16.mxu1 %v2810_v33 }
 0x234   : > { %2813 = vmatpush3.bf16.msra.mxu1 %v5644_v2 }
 0x235   : > { %2815 = vmatprep.subr.bf16.mxu1 %v2814_v26 }
 0x238   : > { %2817 = vmatpush3.bf16.msra.mxu1 %v5642_v42 }
 0x249   : > { %v2781_v61 = vpop.f32.mrb[24].mxu0 }
 0x24a   : > { %v2219_v32 = vadd.f32 %v2781_v61, %v5575_v34  ;;  %v2210_v30 = vpop.f32.mrb[25].mxu0 }
 0x24b   : > { %v2211_v41 = vadd.f32 %v5575_v34, %v2210_v30  ;;  %v2782_v55 = vpop.f32.mrb[26].mxu0 }
 0x24c   : > { %v2222_v16 = vadd.f32 %v2782_v55, %v5575_v34  ;;  %v2213_v14 = vpop.f32.mrb[27].mxu0  ;;  %v2283_v0 = vmax.f32 %v2219_v32, 0.0 }
 0x24d   : > { %v2214_v47 = vadd.f32 %v5575_v34, %v2213_v14  ;;  %v2281_v9 = vmax.f32 %v2211_v41, 0.0 }
 0x24e   : > { %v2284_v12 = vmax.f32 %v2222_v16, 0.0 }
 0x24f   : > { %v2282_v59 = vmax.f32 %v2214_v47, 0.0 }
 0x250   : > { %v2822_v2 = vpack.c.bf16 %v2284_v12, %v2283_v0 }
 0x251   : > { %v2818_v39 = vpack.c.bf16 %v2282_v59, %v2281_v9 }
 0x253   : > { %2819 = vmatprep.subr.bf16.mxu1 %v2818_v39 }
 0x254   : > { %2821 = vmatpush3.bf16.msra.mxu1 %v5654_v37 }
 0x255   : > { %2823 = vmatprep.subr.bf16.mxu1 %v2822_v2 }
 0x258   : > { %2825 = vmatpush3.bf16.msra.mxu1 %v5652_v25  ;;  %v3634_v25 = vmov 0.0|0.0  }
 0x267   : > { %v2785_v42 = vpop.f32.mrb[28].mxu0 }
 0x268   : > { %v2235_v36 = vadd.f32 %v2785_v42, %v5575_v34  ;;  %v2226_v53 = vpop.f32.mrb[29].mxu0 }
 0x269   : > { %v2227_v56 = vadd.f32 %v5575_v34, %v2226_v53  ;;  %v2786_v23 = vpop.f32.mrb[30].mxu0 }
 0x26a   : > { %v2238_v49 = vadd.f32 %v2786_v23, %v5575_v34  ;;  %v2229_v6 = vpop.f32.mrb[31].mxu0  ;;  %v2287_v19 = vmax.f32 %v2235_v36, 0.0 }
 0x26b   : > { %v2230_v57 = vadd.f32 %v5575_v34, %v2229_v6  ;;  %v2285_v22 = vmax.f32 %v2227_v56, 0.0 }
 0x26c   : > { %v2288_v44 = vmax.f32 %v2238_v49, 0.0 }
 0x26d   : > { %v2286_v35 = vmax.f32 %v2230_v57, 0.0 }
 0x26e   : > { %v2830_v37 = vpack.c.bf16 %v2288_v44, %v2287_v19 }
 0x26f   : > { %v2826_v40 = vpack.c.bf16 %v2286_v35, %v2285_v22 }
 0x271   : > { %2827 = vmatprep.subr.bf16.mxu1 %v2826_v40 }
 0x272   : > { %2829 = vmatpush3.bf16.msra.mxu1 %v5662_v31 }
 0x273   : > { %2831 = vmatprep.subr.bf16.mxu1 %v2830_v37 }
 0x276   : > { %2833 = vmatpush3.bf16.msra.mxu1 %v5660_v62 }
 0x277   : > { %2834 = vmatprep.subr.bf16.mxu1 %v3634_v25 }
 0x279   : > { %2380 = vmatmul.mubr.f32.vlgmr.msra.gmra.mrb[0].mxu1 %v5671_v51 }
 0x27a   : > { %2799 = vmatprep.mubr.msk.f32.mxu1 %vm3635_vm15, %v3636_v45 }
 0x287   : > { %v2789_v1 = vpop.f32.mrb[32].mxu0 }
 0x288   : > { %v2251_v15 = vadd.f32 %v2789_v1, %v5575_v34  ;;  %v2242_v63 = vpop.f32.mrb[33].mxu0 }
 0x289   : > { %v2243_v11 = vadd.f32 %v5575_v34, %v2242_v63  ;;  %v2790_v48 = vpop.f32.mrb[34].mxu0 }
 0x28a   : > { %v2254_v13 = vadd.f32 %v2790_v48, %v5575_v34  ;;  %v2245_v31 = vpop.f32.mrb[35].mxu0  ;;  %v2291_v62 = vmax.f32 %v2251_v15, 0.0 }
 0x28b   : > { %v2246_v46 = vadd.f32 %v5575_v34, %v2245_v31  ;;  %v2289_v10 = vmax.f32 %v2243_v11, 0.0 }
 0x28c   : > { %v2292_v29 = vmax.f32 %v2254_v13, 0.0 }
 0x28d   : > { %v2290_v51 = vmax.f32 %v2246_v46, 0.0 }
 0x28e   : > { %v2838_v21 = vpack.c.bf16 %v2292_v29, %v2291_v62 }
 0x28f   : > { %v2835_v38 = vpack.c.bf16 %v2290_v51, %v2289_v10 }
 0x291   : > { %2836 = vmatpush3.bf16.msra.mxu1 %v2835_v38 }
 0x292   : > { %2837 = vmatprep.subr.bf16.mxu1 %v3634_v25 }
 0x295   : > { %2840 = vmatpush3.bf16.msk.msra.mxu1 %vm2839_vm2, %v2838_v21 }
 0x298   : > { %2800 = vmatmul.mubr.msk.f32.vlgmr.msra.gmra.mrb[2].mxu1 %vm2309_vm3, %v5673_v24 }
 0x34c   : > { %v2741_v20 = vpop.f32.mrb[0].mxu1 }
 0x34d   : > { %v2742_v18 = vpop.f32.mrb[1].mxu1 }
 0x34e   : > { %v2743_v5 = vadd.f32 %v2742_v18, %v2741_v20 }
 0x36b   : > { %v2451_v34 = vpop.f32.mrb[2].mxu1 }
 0x36c   : > { %v2452_v4 = vadd.f32 %v2743_v5, %v2451_v34  ;;  %v2801_v27 = vpop.f32.mrb[3].mxu1 }
 0x36e   : > { %v2455_v54 = vpack.c.bf16 %v2452_v4, %v2452_v4 }
 0x370   : > { %v2460_v43 = vsel %vm2458_vm6, %v2455_v54, %v2459_v50 }
 0x371   : > { %2461 = vst [vmem:[%s244_s21] sm:$0x1] %v2460_v43 }
 0x372 PF: > { %s14_s17 = sadd.s32 1, %s3624_s17   ;;  %s5827_s15 = smov %s3620_s16 }
 0x373   : > { %p11_p5 = scmp.ge.s32.totalorder %s14_s17, 4   ;;  %s5828_s16 = smov %s5830_s18 }
 0x375   :  { %13 = sbr.rel (!%p11_p5) target bundleno = 2 (0x2), region = 72 }

</bundles_post_ra>
